<compile_context>
chip_gen: v7x
topology: tpu7x:2x2x1
jax: 0.10.0
libtpu: 0.0.40
codegen_flags: <defaults>
</compile_context>

<pallas_src>
import math

import jax
import jax.numpy as jnp
from jax import lax
from jax.experimental import pallas as pl
from jax.experimental.pallas import tpu as pltpu


def _make_mha_kernel(n_heads, head_dim, has_mask, emit_attn, compute_dtype):
    E = n_heads * head_dim
    cd = compute_dtype

    def kernel(*refs):
        i = 0
        if has_mask:
            mask_ref = refs[i]; i += 1
        xq_ref, xkv_ref, wq_ref, wkv_ref, wo_ref = refs[i:i + 5]; i += 5
        out_ref = refs[i]; i += 1
        if emit_attn:
            attn_ref = refs[i]; i += 1
        kv_ref = refs[i]                      # persistent VMEM scratch [N, 2E]

        # K/V projection: computed once per batch element (first query tile only),
        # reused from scratch for all other query tiles of that batch.
        # Correct because the qi grid axis is "arbitrary" (sequential per core).
        @pl.when(pl.program_id(1) == 0)
        def _():
            kv_ref[...] = jnp.dot(xkv_ref[0], wkv_ref[...],
                                  preferred_element_type=jnp.float32).astype(cd)

        # Q projection for this query tile (1/sqrt(D) pre-folded into Wq).
        q = jnp.dot(xq_ref[0], wq_ref[...],
                    preferred_element_type=jnp.float32).astype(cd)      # [TQ, E]
        kv = kv_ref[...]                                                # [N, 2E]

        if has_mask:
            m8 = mask_ref[0]                                            # [TQ, N] int8
            # no int32 upcast: compare the int8 tile directly
            bias = jnp.where(m8 != 0, jnp.float32(-1e30), jnp.float32(0.0))

        ctx_parts = []
        for h in range(n_heads):
            lo = h * head_dim
            hi = lo + head_dim
            qh = q[:, lo:hi]                 # [TQ, D]
            kh = kv[:, lo:hi]                # [N,  D]
            vh = kv[:, E + lo:E + hi]        # [N,  D]

            # NT-form dot_general: contract on D, no materialized K transpose.
            s = lax.dot_general(qh, kh,
                                dimension_numbers=(((1,), (1,)), ((), ())),
                                preferred_element_type=jnp.float32)     # [TQ, N]
            if has_mask:
                s = s + bias

            m = jnp.max(s, axis=-1, keepdims=True)
            e = jnp.exp(s - m)
            denom = jnp.sum(e, axis=-1, keepdims=True)
            inv = pl.reciprocal(denom, approx=True)        # EUP slot (essentially free)
            inv = inv * (2.0 - denom * inv)                # one Newton step -> full f32
            w = e * inv                                    # softmax, f32

            if emit_attn:
                # per-head lane-dense store; only one [TQ, N] tile live at a time
                attn_ref[0, h] = w.astype(attn_ref.dtype)

            ctx_parts.append(
                jnp.dot(w.astype(cd), vh, preferred_element_type=jnp.float32))  # [TQ, D]

        # TODO(synk): if bundle dumps show XLU lane-pack ops dominating here (D < 128),
        # write per-head contexts into a [TQ, E] VMEM scratch via strided pl.ds stores
        # instead of concatenating register tiles.
        ctx = jnp.concatenate(ctx_parts, axis=-1)                        # [TQ, E]
        out = jnp.dot(ctx.astype(cd), wo_ref[...],
                      preferred_element_type=jnp.float32)
        out_ref[0] = out.astype(out_ref.dtype)

    return kernel


def _device_kind():
    try:
        return jax.devices()[0].device_kind.lower()
    except Exception:
        return ""


def _vmem_capacity_bytes():
    try:
        return int(getattr(pltpu.get_tpu_info(), "vmem_capacity_bytes", 128 * 2 ** 20))
    except Exception:
        return 128 * 2 ** 20


def _pick_q_tile(N):
    # v5e MXU is 4x128^2 -> TQ=256 gains nothing but doubles the score working set;
    # v6e/v7x MXU tiles are 256 wide -> fill M with 256. Prefer multiples of 32
    # (int8-mask sublane packing, bf16 packing).
    max_tq = 128 if "v5" in _device_kind() else 256
    if N <= max_tq:
        return N
    for t in (256, 128, 64, 32, 16, 8):
        if t <= max_tq and N % t == 0:
            return t
    return N


def multi_head_attention(params, q, k=None, v=None, attn_mask=None, *, n_heads,
                         return_attn=True, compute_dtype=jnp.float32,
                         attn_dtype=None, q_tile=None):
    """params: dict of PyTorch-layout [out,in] weights 'wq','wk','wv','wo'.
    q/k/v: [B, N, E]. attn_mask: bool/int [N,N] (shared) or [B,N,N]; nonzero = masked.
    attn_dtype defaults to bfloat16 (softmax math stays f32, cast on store)."""
    if k is None:
        k = q
    if v is None:
        v = q
    if k is not v:
        # TODO(synk): distinct key/value source tensors would need an un-fused K/V path
        # (identity check; semantically-equal-but-distinct arrays are also rejected).
        raise NotImplementedError("fused-KV kernel assumes k and v come from the same tensor")
    if attn_dtype is None:
        attn_dtype = jnp.bfloat16

    B, N, E = q.shape
    D = E // n_heads
    assert D * n_heads == E, "embedding_dim must be divisible by n_heads"
    norm = 1.0 / math.sqrt(D)
    cd = compute_dtype

    # Weight prep (host side, one time): transpose to [in, out], fold softmax scale
    # into Wq, fuse K and V into a single [E, 2E] operand.
    wq_t = (params["wq"].T * norm).astype(cd)
    wkv_t = jnp.concatenate([params["wk"].T, params["wv"].T], axis=1).astype(cd)
    wo_t = params["wo"].T.astype(cd)

    xq = q.astype(cd)
    xkv = k.astype(cd)

    TQ = q_tile if q_tile is not None else _pick_q_tile(N)
    assert N % TQ == 0 and (TQ == N or TQ % 8 == 0)
    n_q = N // TQ

    has_mask = attn_mask is not None
    inputs = []
    in_specs = []
    if has_mask:
        m = attn_mask
        if m.ndim == 2:
            m = m[None]                                   # [1, N, N], shared across batch
            m_idx = lambda b, qi: (0, qi, 0)              # never re-DMA'd per batch element
        else:
            m_idx = lambda b, qi: (b, qi, 0)
        mask_i8 = (m != 0).astype(jnp.int8)               # 1 byte/elem DMA instead of 4
        inputs.append(mask_i8)
        in_specs.append(pl.BlockSpec((1, TQ, N), m_idx))

    single = pl.Buffered(1)                               # constant-index blocks: no 2nd buffer
    inputs += [xq, xkv, wq_t, wkv_t, wo_t]
    in_specs += [
        pl.BlockSpec((1, TQ, E), lambda b, qi: (b, qi, 0)),                            # query tile
        pl.BlockSpec((1, N, E), lambda b, qi: (b, 0, 0), pipeline_mode=single),        # full seq for K/V
        pl.BlockSpec((E, E), lambda b, qi: (0, 0), pipeline_mode=single),              # Wq (scale folded)
        pl.BlockSpec((E, 2 * E), lambda b, qi: (0, 0), pipeline_mode=single),          # fused Wk|Wv
        pl.BlockSpec((E, E), lambda b, qi: (0, 0), pipeline_mode=single),              # Wo
    ]

    out_spec_o = pl.BlockSpec((1, TQ, E), lambda b, qi: (b, qi, 0))
    if return_attn:
        out_shape = (
            jax.ShapeDtypeStruct((B, N, E), jnp.float32),
            jax.ShapeDtypeStruct((B, n_heads, N, N), attn_dtype),
        )
        out_specs = [
            out_spec_o,
            pl.BlockSpec((1, n_heads, TQ, N), lambda b, qi: (b, 0, qi, 0)),
        ]
    else:
        out_shape = jax.ShapeDtypeStruct((B, N, E), jnp.float32)
        out_specs = out_spec_o

    kernel = _make_mha_kernel(n_heads, D, has_mask, return_attn, cd)

    # Per-step VMEM budget: single-buffered weights/xkv + KV scratch + double-buffered
    # per-tile blocks + f32 in-kernel temporaries. Cap at ~80% of physical VMEM.
    bs = jnp.dtype(cd).itemsize
    abs_ = jnp.dtype(attn_dtype).itemsize
    est = (
        4 * E * E * bs                 # Wq + Wkv + Wo (single-buffered)
        + N * E * bs                   # xkv (single-buffered)
        + N * 2 * E * bs               # KV scratch
        + 2 * (TQ * E * bs)            # query tile (double-buffered)
        + 2 * (TQ * E * 4)             # output tile (double-buffered)
        + (2 * n_heads * TQ * N * abs_ if return_attn else 0)
        + (2 * TQ * N if has_mask else 0)
        + 2 * TQ * E * 4 + 4 * TQ * N * 4   # q/ctx + score/exp temporaries
    )
    vmem_cap = _vmem_capacity_bytes()
    vmem_limit = int(min(max(32 * 2 ** 20, int(0.8 * vmem_cap)),
                         max(32 * 2 ** 20, 2 * est)))

    result = pl.pallas_call(
        kernel,
        out_shape=out_shape,
        grid_spec=pltpu.PrefetchScalarGridSpec(
            num_scalar_prefetch=0,
            grid=(B, n_q),
            in_specs=in_specs,
            out_specs=out_specs,
            scratch_shapes=[pltpu.VMEM((N, 2 * E), cd)],   # cached K/V projection
        ),
        compiler_params=pltpu.CompilerParams(
            # qi must be "arbitrary": the KV scratch is carried across query tiles.
            dimension_semantics=("parallel", "arbitrary"),
            vmem_limit_bytes=vmem_limit,
        ),
    )(*inputs)

    if return_attn:
        out, attn = result
        return out, attn
    return result


def xavier_uniform(key, out_features, in_features):
    # matches torch.nn.init.xavier_uniform_ for a [out, in] Linear weight
    a = math.sqrt(6.0 / (in_features + out_features))
    return jax.random.uniform(key, (out_features, in_features),
                              dtype=jnp.float32, minval=-a, maxval=a)


def init_mha_params(key, embedding_dim):
    kq, kk, kv, ko = jax.random.split(key, 4)
    E = embedding_dim
    return {
        "wq": xavier_uniform(kq, E, E),
        "wk": xavier_uniform(kk, E, E),
        "wv": xavier_uniform(kv, E, E),
        "wo": xavier_uniform(ko, E, E),
    }


def reference_mha(x, params, n_heads, attn_mask=None):
    # plain-JAX reference mirroring the PyTorch forward (weights are [out, in])
    B, N, E = x.shape
    D = E // n_heads
    Q = x @ params["wq"].T
    K = x @ params["wk"].T
    V = x @ params["wv"].T
    Q = Q.reshape(B, N, n_heads, D).transpose(0, 2, 1, 3)
    K = K.reshape(B, N, n_heads, D).transpose(0, 2, 1, 3)
    V = V.reshape(B, N, n_heads, D).transpose(0, 2, 1, 3)
    s = jnp.einsum('bhnd,bhmd->bhnm', Q, K) / math.sqrt(D)
    if attn_mask is not None:
        bias = jnp.where(attn_mask, -1e30, 0.0)
        if attn_mask.ndim == 3:
            bias = bias[:, None]
        s = s + bias
    w = jax.nn.softmax(s, axis=-1)
    ctx = jnp.einsum('bhnm,bhmd->bhnd', w, V)
    ctx = ctx.transpose(0, 2, 1, 3).reshape(B, N, E)
    return ctx @ params["wo"].T, w


if __name__ == "__main__":
    B, N, E, H = 2, 8, 32, 8

    key = jax.random.PRNGKey(0)
    kx, kp = jax.random.split(key, 2)
    x = jax.random.normal(kx, (B, N, E), dtype=jnp.float32)
    params = init_mha_params(kp, E)

    out_ref, attn_ref = reference_mha(x, params, H)

    # --- f32 compute, f32 attention output, no mask (tight check vs reference) ---
    out, attn = multi_head_attention(params, x, n_heads=H, attn_dtype=jnp.float32)
    out = jax.block_until_ready(out)
    attn = jax.block_until_ready(attn)
    assert out.shape == (B, N, E) and attn.shape == (B, H, N, N)
    assert jnp.allclose(out, out_ref, atol=1e-4, rtol=1e-4)
    assert jnp.allclose(attn, attn_ref, atol=1e-4, rtol=1e-4)

    # --- f32, batch-shared boolean (causal) mask ---
    mask = jnp.triu(jnp.ones((N, N), dtype=jnp.bool_), k=1)
    out_m, attn_m = multi_head_attention(params, x, attn_mask=mask, n_heads=H,
                                         attn_dtype=jnp.float32)
    out_m = jax.block_until_ready(out_m)
    attn_m = jax.block_until_ready(attn_m)
    out_mr, attn_mr = reference_mha(x, params, H, attn_mask=mask)
    assert jnp.allclose(out_m, out_mr, atol=1e-4, rtol=1e-4)
    assert jnp.allclose(attn_m, attn_mr, atol=1e-4, rtol=1e-4)

    # --- default attn_dtype (bf16 writeback, f32 math): out still exact, attn loose ---
    out_d, attn_d = multi_head_attention(params, x, n_heads=H)
    out_d = jax.block_until_ready(out_d)
    attn_d = jax.block_until_ready(attn_d)
    assert attn_d.dtype == jnp.bfloat16
    assert jnp.allclose(out_d, out_ref, atol=1e-4, rtol=1e-4)
    assert jnp.allclose(attn_d.astype(jnp.float32), attn_ref, atol=1e-2, rtol=1e-2)

    # --- bf16 compute path (v6e/v7x), attention tensor not emitted ---
    out_bf = multi_head_attention(params, x, n_heads=H, return_attn=False,
                                  compute_dtype=jnp.bfloat16)
    out_bf = jax.block_until_ready(out_bf)
    assert out_bf.shape == (B, N, E)
    assert jnp.allclose(out_bf, out_ref, atol=5e-2, rtol=5e-2)

    print("KERNEL_OK")
</pallas_src>

<mosaic_0001>
module attributes {stable_mosaic.version = 11 : i64} {
  func.func @kernel(%arg0: i32, %arg1: i32, %arg2: memref<1x8x32xf32, #tpu.memory_space<vmem>>, %arg3: memref<1x8x32xf32, #tpu.memory_space<vmem>>, %arg4: memref<32x32xf32, #tpu.memory_space<vmem>>, %arg5: memref<32x64xf32, #tpu.memory_space<vmem>>, %arg6: memref<32x32xf32, #tpu.memory_space<vmem>>, %arg7: memref<1x8x32xf32, #tpu.memory_space<vmem>>, %arg8: memref<1x8x8x8xf32, #tpu.memory_space<vmem>>, %arg9: memref<8x64xf32, #tpu.memory_space<vmem>>) attributes {dimension_semantics = [#tpu.dimension_semantics<parallel>, #tpu.dimension_semantics<arbitrary>], iteration_bounds = array<i64: 2, 1>, scalar_prefetch = 0 : i64, scratch_operands = 1 : i64, tpu.core_type = #tpu.core_type<tc>, window_params = [{transform_indices = @transform_0, window_bounds = array<i64: 1, 8, 32>}, {pipeline_mode = #tpu.pipeline_mode<synchronous>, transform_indices = @transform_1, window_bounds = array<i64: 1, 8, 32>}, {pipeline_mode = #tpu.pipeline_mode<synchronous>, transform_indices = @transform_2, window_bounds = array<i64: 32, 32>}, {pipeline_mode = #tpu.pipeline_mode<synchronous>, transform_indices = @transform_3, window_bounds = array<i64: 32, 64>}, {pipeline_mode = #tpu.pipeline_mode<synchronous>, transform_indices = @transform_4, window_bounds = array<i64: 32, 32>}, {transform_indices = @transform_5, window_bounds = array<i64: 1, 8, 32>}, {transform_indices = @transform_6, window_bounds = array<i64: 1, 8, 8, 8>}]} {
    %c0_i32 = arith.constant 0 : i32
    %0 = arith.cmpi eq, %arg1, %c0_i32 : i32
    %1 = arith.extui %0 : i1 to i32
    %c0_i32_0 = arith.constant 0 : i32
    %2 = arith.cmpi ne, %1, %c0_i32_0 : i32
    scf.if %2 {
      %c0_78 = arith.constant 0 : index
      %c0_79 = arith.constant 0 : index
      %c0_80 = arith.constant 0 : index
      %190 = vector.load %arg3[%c0_78, %c0_79, %c0_80] : memref<1x8x32xf32, #tpu.memory_space<vmem>>, vector<1x8x32xf32>
      %191 = vector.shape_cast %190 : vector<1x8x32xf32> to vector<8x32xf32>
      %c0_81 = arith.constant 0 : index
      %c0_82 = arith.constant 0 : index
      %192 = vector.load %arg5[%c0_81, %c0_82] : memref<32x64xf32, #tpu.memory_space<vmem>>, vector<32x64xf32>
      %cst_83 = arith.constant dense<0.000000e+00> : vector<8x64xf32>
      %193 = tpu.matmul %191, %192, %cst_83 {dimension_numbers = #tpu.dot_dimension_numbers<[1], [0], [0], [1], [0, 0, 1, 1], [], []>} : vector<8x32xf32>, vector<32x64xf32>, vector<8x64xf32> -> vector<8x64xf32>
      %c0_84 = arith.constant 0 : index
      %c0_85 = arith.constant 0 : index
      %194 = vector.load %arg9[%c0_84, %c0_85] : memref<8x64xf32, #tpu.memory_space<vmem>>, vector<8x64xf32>
      tpu.vector_store %arg9[%c0_84, %c0_85], %193 {strides = array<i32>} : memref<8x64xf32, #tpu.memory_space<vmem>>, vector<8x64xf32>,
    } else {
    }
    %c0 = arith.constant 0 : index
    %c0_1 = arith.constant 0 : index
    %c0_2 = arith.constant 0 : index
    %3 = vector.load %arg2[%c0, %c0_1, %c0_2] : memref<1x8x32xf32, #tpu.memory_space<vmem>>, vector<1x8x32xf32>
    %4 = vector.shape_cast %3 : vector<1x8x32xf32> to vector<8x32xf32>
    %c0_3 = arith.constant 0 : index
    %c0_4 = arith.constant 0 : index
    %5 = vector.load %arg4[%c0_3, %c0_4] : memref<32x32xf32, #tpu.memory_space<vmem>>, vector<32x32xf32>
    %cst = arith.constant dense<0.000000e+00> : vector<8x32xf32>
    %6 = tpu.matmul %4, %5, %cst {dimension_numbers = #tpu.dot_dimension_numbers<[1], [0], [0], [1], [0, 0, 1, 1], [], []>} : vector<8x32xf32>, vector<32x32xf32>, vector<8x32xf32> -> vector<8x32xf32>
    %c0_5 = arith.constant 0 : index
    %c0_6 = arith.constant 0 : index
    %7 = vector.load %arg9[%c0_5, %c0_6] : memref<8x64xf32, #tpu.memory_space<vmem>>, vector<8x64xf32>
    %8 = vector.extract_strided_slice %6 {offsets = [0, 0], sizes = [8, 4], strides = [1, 1]} : vector<8x32xf32> to vector<8x4xf32>
    %9 = vector.extract_strided_slice %7 {offsets = [0, 0], sizes = [8, 4], strides = [1, 1]} : vector<8x64xf32> to vector<8x4xf32>
    %10 = vector.extract_strided_slice %7 {offsets = [0, 32], sizes = [8, 4], strides = [1, 1]} : vector<8x64xf32> to vector<8x4xf32>
    %cst_7 = arith.constant dense<0.000000e+00> : vector<8x8xf32>
    %11 = tpu.matmul %8, %9, %cst_7 {dimension_numbers = #tpu.dot_dimension_numbers<[1], [1], [0], [0], [0, 0, 1, 0], [], []>} : vector<8x4xf32>, vector<8x4xf32>, vector<8x8xf32> -> vector<8x8xf32>
    %cst_8 = arith.constant dense<0xFF800000> : vector<8xf32>
    %12 = vector.multi_reduction <maximumf>, %11, %cst_8 [1] : vector<8x8xf32> to vector<8xf32>
    %13 = vector.shape_cast %12 : vector<8xf32> to vector<8x1xf32>
    %14 = vector.broadcast %13 : vector<8x1xf32> to vector<8x8xf32>
    %15 = arith.subf %11, %14 : vector<8x8xf32>
    %16 = math.exp %15 : vector<8x8xf32>
    %cst_9 = arith.constant dense<0.000000e+00> : vector<8xf32>
    %17 = vector.multi_reduction <add>, %16, %cst_9 [1] : vector<8x8xf32> to vector<8xf32>
    %18 = vector.shape_cast %17 : vector<8xf32> to vector<8x1xf32>
    %19 = tpu.reciprocal %18 {approx = true} : vector<8x1xf32> -> vector<8x1xf32>
    %20 = arith.mulf %18, %19 : vector<8x1xf32>
    %cst_10 = arith.constant 2.000000e+00 : f32
    %21 = vector.broadcast %cst_10 : f32 to vector<8x1xf32>
    %22 = arith.subf %21, %20 : vector<8x1xf32>
    %23 = arith.mulf %19, %22 : vector<8x1xf32>
    %24 = vector.broadcast %23 : vector<8x1xf32> to vector<8x8xf32>
    %25 = arith.mulf %16, %24 : vector<8x8xf32>
    %c0_11 = arith.constant 0 : index
    %c0_12 = arith.constant 0 : index
    %c0_13 = arith.constant 0 : index
    %c0_14 = arith.constant 0 : index
    %26 = vector.load %arg8[%c0_11, %c0_12, %c0_13, %c0_14] : memref<1x8x8x8xf32, #tpu.memory_space<vmem>>, vector<1x1x8x8xf32>
    %27 = vector.shape_cast %26 : vector<1x1x8x8xf32> to vector<8x8xf32>
    %28 = vector.shape_cast %25 : vector<8x8xf32> to vector<1x1x8x8xf32>
    tpu.vector_store %arg8[%c0_11, %c0_12, %c0_13, %c0_14], %28 {strides = array<i32>} : memref<1x8x8x8xf32, #tpu.memory_space<vmem>>, vector<1x1x8x8xf32>,
    %cst_15 = arith.constant dense<0.000000e+00> : vector<8x4xf32>
    %29 = tpu.matmul %25, %10, %cst_15 {dimension_numbers = #tpu.dot_dimension_numbers<[1], [0], [0], [1], [0, 0, 1, 1], [], []>} : vector<8x8xf32>, vector<8x4xf32>, vector<8x4xf32> -> vector<8x4xf32>
    %30 = vector.extract_strided_slice %6 {offsets = [0, 4], sizes = [8, 4], strides = [1, 1]} : vector<8x32xf32> to vector<8x4xf32>
    %31 = vector.extract_strided_slice %7 {offsets = [0, 4], sizes = [8, 4], strides = [1, 1]} : vector<8x64xf32> to vector<8x4xf32>
    %32 = vector.extract_strided_slice %7 {offsets = [0, 36], sizes = [8, 4], strides = [1, 1]} : vector<8x64xf32> to vector<8x4xf32>
    %cst_16 = arith.constant dense<0.000000e+00> : vector<8x8xf32>
    %33 = tpu.matmul %30, %31, %cst_16 {dimension_numbers = #tpu.dot_dimension_numbers<[1], [1], [0], [0], [0, 0, 1, 0], [], []>} : vector<8x4xf32>, vector<8x4xf32>, vector<8x8xf32> -> vector<8x8xf32>
    %cst_17 = arith.constant dense<0xFF800000> : vector<8xf32>
    %34 = vector.multi_reduction <maximumf>, %33, %cst_17 [1] : vector<8x8xf32> to vector<8xf32>
    %35 = vector.shape_cast %34 : vector<8xf32> to vector<8x1xf32>
    %36 = vector.broadcast %35 : vector<8x1xf32> to vector<8x8xf32>
    %37 = arith.subf %33, %36 : vector<8x8xf32>
    %38 = math.exp %37 : vector<8x8xf32>
    %cst_18 = arith.constant dense<0.000000e+00> : vector<8xf32>
    %39 = vector.multi_reduction <add>, %38, %cst_18 [1] : vector<8x8xf32> to vector<8xf32>
    %40 = vector.shape_cast %39 : vector<8xf32> to vector<8x1xf32>
    %41 = tpu.reciprocal %40 {approx = true} : vector<8x1xf32> -> vector<8x1xf32>
    %42 = arith.mulf %40, %41 : vector<8x1xf32>
    %cst_19 = arith.constant 2.000000e+00 : f32
    %43 = vector.broadcast %cst_19 : f32 to vector<8x1xf32>
    %44 = arith.subf %43, %42 : vector<8x1xf32>
    %45 = arith.mulf %41, %44 : vector<8x1xf32>
    %46 = vector.broadcast %45 : vector<8x1xf32> to vector<8x8xf32>
    %47 = arith.mulf %38, %46 : vector<8x8xf32>
    %c0_20 = arith.constant 0 : index
    %c1 = arith.constant 1 : index
    %c0_21 = arith.constant 0 : index
    %c0_22 = arith.constant 0 : index
    %48 = vector.load %arg8[%c0_20, %c1, %c0_21, %c0_22] : memref<1x8x8x8xf32, #tpu.memory_space<vmem>>, vector<1x1x8x8xf32>
    %49 = vector.shape_cast %48 : vector<1x1x8x8xf32> to vector<8x8xf32>
    %50 = vector.shape_cast %47 : vector<8x8xf32> to vector<1x1x8x8xf32>
    tpu.vector_store %arg8[%c0_20, %c1, %c0_21, %c0_22], %50 {strides = array<i32>} : memref<1x8x8x8xf32, #tpu.memory_space<vmem>>, vector<1x1x8x8xf32>,
    %cst_23 = arith.constant dense<0.000000e+00> : vector<8x4xf32>
    %51 = tpu.matmul %47, %32, %cst_23 {dimension_numbers = #tpu.dot_dimension_numbers<[1], [0], [0], [1], [0, 0, 1, 1], [], []>} : vector<8x8xf32>, vector<8x4xf32>, vector<8x4xf32> -> vector<8x4xf32>
    %52 = vector.extract_strided_slice %6 {offsets = [0, 8], sizes = [8, 4], strides = [1, 1]} : vector<8x32xf32> to vector<8x4xf32>
    %53 = vector.extract_strided_slice %7 {offsets = [0, 8], sizes = [8, 4], strides = [1, 1]} : vector<8x64xf32> to vector<8x4xf32>
    %54 = vector.extract_strided_slice %7 {offsets = [0, 40], sizes = [8, 4], strides = [1, 1]} : vector<8x64xf32> to vector<8x4xf32>
    %cst_24 = arith.constant dense<0.000000e+00> : vector<8x8xf32>
    %55 = tpu.matmul %52, %53, %cst_24 {dimension_numbers = #tpu.dot_dimension_numbers<[1], [1], [0], [0], [0, 0, 1, 0], [], []>} : vector<8x4xf32>, vector<8x4xf32>, vector<8x8xf32> -> vector<8x8xf32>
    %cst_25 = arith.constant dense<0xFF800000> : vector<8xf32>
    %56 = vector.multi_reduction <maximumf>, %55, %cst_25 [1] : vector<8x8xf32> to vector<8xf32>
    %57 = vector.shape_cast %56 : vector<8xf32> to vector<8x1xf32>
    %58 = vector.broadcast %57 : vector<8x1xf32> to vector<8x8xf32>
    %59 = arith.subf %55, %58 : vector<8x8xf32>
    %60 = math.exp %59 : vector<8x8xf32>
    %cst_26 = arith.constant dense<0.000000e+00> : vector<8xf32>
    %61 = vector.multi_reduction <add>, %60, %cst_26 [1] : vector<8x8xf32> to vector<8xf32>
    %62 = vector.shape_cast %61 : vector<8xf32> to vector<8x1xf32>
    %63 = tpu.reciprocal %62 {approx = true} : vector<8x1xf32> -> vector<8x1xf32>
    %64 = arith.mulf %62, %63 : vector<8x1xf32>
    %cst_27 = arith.constant 2.000000e+00 : f32
    %65 = vector.broadcast %cst_27 : f32 to vector<8x1xf32>
    %66 = arith.subf %65, %64 : vector<8x1xf32>
    %67 = arith.mulf %63, %66 : vector<8x1xf32>
    %68 = vector.broadcast %67 : vector<8x1xf32> to vector<8x8xf32>
    %69 = arith.mulf %60, %68 : vector<8x8xf32>
    %c0_28 = arith.constant 0 : index
    %c2 = arith.constant 2 : index
    %c0_29 = arith.constant 0 : index
    %c0_30 = arith.constant 0 : index
    %70 = vector.load %arg8[%c0_28, %c2, %c0_29, %c0_30] : memref<1x8x8x8xf32, #tpu.memory_space<vmem>>, vector<1x1x8x8xf32>
    %71 = vector.shape_cast %70 : vector<1x1x8x8xf32> to vector<8x8xf32>
    %72 = vector.shape_cast %69 : vector<8x8xf32> to vector<1x1x8x8xf32>
    tpu.vector_store %arg8[%c0_28, %c2, %c0_29, %c0_30], %72 {strides = array<i32>} : memref<1x8x8x8xf32, #tpu.memory_space<vmem>>, vector<1x1x8x8xf32>,
    %cst_31 = arith.constant dense<0.000000e+00> : vector<8x4xf32>
    %73 = tpu.matmul %69, %54, %cst_31 {dimension_numbers = #tpu.dot_dimension_numbers<[1], [0], [0], [1], [0, 0, 1, 1], [], []>} : vector<8x8xf32>, vector<8x4xf32>, vector<8x4xf32> -> vector<8x4xf32>
    %74 = vector.extract_strided_slice %6 {offsets = [0, 12], sizes = [8, 4], strides = [1, 1]} : vector<8x32xf32> to vector<8x4xf32>
    %75 = vector.extract_strided_slice %7 {offsets = [0, 12], sizes = [8, 4], strides = [1, 1]} : vector<8x64xf32> to vector<8x4xf32>
    %76 = vector.extract_strided_slice %7 {offsets = [0, 44], sizes = [8, 4], strides = [1, 1]} : vector<8x64xf32> to vector<8x4xf32>
    %cst_32 = arith.constant dense<0.000000e+00> : vector<8x8xf32>
    %77 = tpu.matmul %74, %75, %cst_32 {dimension_numbers = #tpu.dot_dimension_numbers<[1], [1], [0], [0], [0, 0, 1, 0], [], []>} : vector<8x4xf32>, vector<8x4xf32>, vector<8x8xf32> -> vector<8x8xf32>
    %cst_33 = arith.constant dense<0xFF800000> : vector<8xf32>
    %78 = vector.multi_reduction <maximumf>, %77, %cst_33 [1] : vector<8x8xf32> to vector<8xf32>
    %79 = vector.shape_cast %78 : vector<8xf32> to vector<8x1xf32>
    %80 = vector.broadcast %79 : vector<8x1xf32> to vector<8x8xf32>
    %81 = arith.subf %77, %80 : vector<8x8xf32>
    %82 = math.exp %81 : vector<8x8xf32>
    %cst_34 = arith.constant dense<0.000000e+00> : vector<8xf32>
    %83 = vector.multi_reduction <add>, %82, %cst_34 [1] : vector<8x8xf32> to vector<8xf32>
    %84 = vector.shape_cast %83 : vector<8xf32> to vector<8x1xf32>
    %85 = tpu.reciprocal %84 {approx = true} : vector<8x1xf32> -> vector<8x1xf32>
    %86 = arith.mulf %84, %85 : vector<8x1xf32>
    %cst_35 = arith.constant 2.000000e+00 : f32
    %87 = vector.broadcast %cst_35 : f32 to vector<8x1xf32>
    %88 = arith.subf %87, %86 : vector<8x1xf32>
    %89 = arith.mulf %85, %88 : vector<8x1xf32>
    %90 = vector.broadcast %89 : vector<8x1xf32> to vector<8x8xf32>
    %91 = arith.mulf %82, %90 : vector<8x8xf32>
    %c0_36 = arith.constant 0 : index
    %c3 = arith.constant 3 : index
    %c0_37 = arith.constant 0 : index
    %c0_38 = arith.constant 0 : index
    %92 = vector.load %arg8[%c0_36, %c3, %c0_37, %c0_38] : memref<1x8x8x8xf32, #tpu.memory_space<vmem>>, vector<1x1x8x8xf32>
    %93 = vector.shape_cast %92 : vector<1x1x8x8xf32> to vector<8x8xf32>
    %94 = vector.shape_cast %91 : vector<8x8xf32> to vector<1x1x8x8xf32>
    tpu.vector_store %arg8[%c0_36, %c3, %c0_37, %c0_38], %94 {strides = array<i32>} : memref<1x8x8x8xf32, #tpu.memory_space<vmem>>, vector<1x1x8x8xf32>,
    %cst_39 = arith.constant dense<0.000000e+00> : vector<8x4xf32>
    %95 = tpu.matmul %91, %76, %cst_39 {dimension_numbers = #tpu.dot_dimension_numbers<[1], [0], [0], [1], [0, 0, 1, 1], [], []>} : vector<8x8xf32>, vector<8x4xf32>, vector<8x4xf32> -> vector<8x4xf32>
    %96 = vector.extract_strided_slice %6 {offsets = [0, 16], sizes = [8, 4], strides = [1, 1]} : vector<8x32xf32> to vector<8x4xf32>
    %97 = vector.extract_strided_slice %7 {offsets = [0, 16], sizes = [8, 4], strides = [1, 1]} : vector<8x64xf32> to vector<8x4xf32>
    %98 = vector.extract_strided_slice %7 {offsets = [0, 48], sizes = [8, 4], strides = [1, 1]} : vector<8x64xf32> to vector<8x4xf32>
    %cst_40 = arith.constant dense<0.000000e+00> : vector<8x8xf32>
    %99 = tpu.matmul %96, %97, %cst_40 {dimension_numbers = #tpu.dot_dimension_numbers<[1], [1], [0], [0], [0, 0, 1, 0], [], []>} : vector<8x4xf32>, vector<8x4xf32>, vector<8x8xf32> -> vector<8x8xf32>
    %cst_41 = arith.constant dense<0xFF800000> : vector<8xf32>
    %100 = vector.multi_reduction <maximumf>, %99, %cst_41 [1] : vector<8x8xf32> to vector<8xf32>
    %101 = vector.shape_cast %100 : vector<8xf32> to vector<8x1xf32>
    %102 = vector.broadcast %101 : vector<8x1xf32> to vector<8x8xf32>
    %103 = arith.subf %99, %102 : vector<8x8xf32>
    %104 = math.exp %103 : vector<8x8xf32>
    %cst_42 = arith.constant dense<0.000000e+00> : vector<8xf32>
    %105 = vector.multi_reduction <add>, %104, %cst_42 [1] : vector<8x8xf32> to vector<8xf32>
    %106 = vector.shape_cast %105 : vector<8xf32> to vector<8x1xf32>
    %107 = tpu.reciprocal %106 {approx = true} : vector<8x1xf32> -> vector<8x1xf32>
    %108 = arith.mulf %106, %107 : vector<8x1xf32>
    %cst_43 = arith.constant 2.000000e+00 : f32
    %109 = vector.broadcast %cst_43 : f32 to vector<8x1xf32>
    %110 = arith.subf %109, %108 : vector<8x1xf32>
    %111 = arith.mulf %107, %110 : vector<8x1xf32>
    %112 = vector.broadcast %111 : vector<8x1xf32> to vector<8x8xf32>
    %113 = arith.mulf %104, %112 : vector<8x8xf32>
    %c0_44 = arith.constant 0 : index
    %c4 = arith.constant 4 : index
    %c0_45 = arith.constant 0 : index
    %c0_46 = arith.constant 0 : index
    %114 = vector.load %arg8[%c0_44, %c4, %c0_45, %c0_46] : memref<1x8x8x8xf32, #tpu.memory_space<vmem>>, vector<1x1x8x8xf32>
    %115 = vector.shape_cast %114 : vector<1x1x8x8xf32> to vector<8x8xf32>
    %116 = vector.shape_cast %113 : vector<8x8xf32> to vector<1x1x8x8xf32>
    tpu.vector_store %arg8[%c0_44, %c4, %c0_45, %c0_46], %116 {strides = array<i32>} : memref<1x8x8x8xf32, #tpu.memory_space<vmem>>, vector<1x1x8x8xf32>,
    %cst_47 = arith.constant dense<0.000000e+00> : vector<8x4xf32>
    %117 = tpu.matmul %113, %98, %cst_47 {dimension_numbers = #tpu.dot_dimension_numbers<[1], [0], [0], [1], [0, 0, 1, 1], [], []>} : vector<8x8xf32>, vector<8x4xf32>, vector<8x4xf32> -> vector<8x4xf32>
    %118 = vector.extract_strided_slice %6 {offsets = [0, 20], sizes = [8, 4], strides = [1, 1]} : vector<8x32xf32> to vector<8x4xf32>
    %119 = vector.extract_strided_slice %7 {offsets = [0, 20], sizes = [8, 4], strides = [1, 1]} : vector<8x64xf32> to vector<8x4xf32>
    %120 = vector.extract_strided_slice %7 {offsets = [0, 52], sizes = [8, 4], strides = [1, 1]} : vector<8x64xf32> to vector<8x4xf32>
    %cst_48 = arith.constant dense<0.000000e+00> : vector<8x8xf32>
    %121 = tpu.matmul %118, %119, %cst_48 {dimension_numbers = #tpu.dot_dimension_numbers<[1], [1], [0], [0], [0, 0, 1, 0], [], []>} : vector<8x4xf32>, vector<8x4xf32>, vector<8x8xf32> -> vector<8x8xf32>
    %cst_49 = arith.constant dense<0xFF800000> : vector<8xf32>
    %122 = vector.multi_reduction <maximumf>, %121, %cst_49 [1] : vector<8x8xf32> to vector<8xf32>
    %123 = vector.shape_cast %122 : vector<8xf32> to vector<8x1xf32>
    %124 = vector.broadcast %123 : vector<8x1xf32> to vector<8x8xf32>
    %125 = arith.subf %121, %124 : vector<8x8xf32>
    %126 = math.exp %125 : vector<8x8xf32>
    %cst_50 = arith.constant dense<0.000000e+00> : vector<8xf32>
    %127 = vector.multi_reduction <add>, %126, %cst_50 [1] : vector<8x8xf32> to vector<8xf32>
    %128 = vector.shape_cast %127 : vector<8xf32> to vector<8x1xf32>
    %129 = tpu.reciprocal %128 {approx = true} : vector<8x1xf32> -> vector<8x1xf32>
    %130 = arith.mulf %128, %129 : vector<8x1xf32>
    %cst_51 = arith.constant 2.000000e+00 : f32
    %131 = vector.broadcast %cst_51 : f32 to vector<8x1xf32>
    %132 = arith.subf %131, %130 : vector<8x1xf32>
    %133 = arith.mulf %129, %132 : vector<8x1xf32>
    %134 = vector.broadcast %133 : vector<8x1xf32> to vector<8x8xf32>
    %135 = arith.mulf %126, %134 : vector<8x8xf32>
    %c0_52 = arith.constant 0 : index
    %c5 = arith.constant 5 : index
    %c0_53 = arith.constant 0 : index
    %c0_54 = arith.constant 0 : index
    %136 = vector.load %arg8[%c0_52, %c5, %c0_53, %c0_54] : memref<1x8x8x8xf32, #tpu.memory_space<vmem>>, vector<1x1x8x8xf32>
    %137 = vector.shape_cast %136 : vector<1x1x8x8xf32> to vector<8x8xf32>
    %138 = vector.shape_cast %135 : vector<8x8xf32> to vector<1x1x8x8xf32>
    tpu.vector_store %arg8[%c0_52, %c5, %c0_53, %c0_54], %138 {strides = array<i32>} : memref<1x8x8x8xf32, #tpu.memory_space<vmem>>, vector<1x1x8x8xf32>,
    %cst_55 = arith.constant dense<0.000000e+00> : vector<8x4xf32>
    %139 = tpu.matmul %135, %120, %cst_55 {dimension_numbers = #tpu.dot_dimension_numbers<[1], [0], [0], [1], [0, 0, 1, 1], [], []>} : vector<8x8xf32>, vector<8x4xf32>, vector<8x4xf32> -> vector<8x4xf32>
    %140 = vector.extract_strided_slice %6 {offsets = [0, 24], sizes = [8, 4], strides = [1, 1]} : vector<8x32xf32> to vector<8x4xf32>
    %141 = vector.extract_strided_slice %7 {offsets = [0, 24], sizes = [8, 4], strides = [1, 1]} : vector<8x64xf32> to vector<8x4xf32>
    %142 = vector.extract_strided_slice %7 {offsets = [0, 56], sizes = [8, 4], strides = [1, 1]} : vector<8x64xf32> to vector<8x4xf32>
    %cst_56 = arith.constant dense<0.000000e+00> : vector<8x8xf32>
    %143 = tpu.matmul %140, %141, %cst_56 {dimension_numbers = #tpu.dot_dimension_numbers<[1], [1], [0], [0], [0, 0, 1, 0], [], []>} : vector<8x4xf32>, vector<8x4xf32>, vector<8x8xf32> -> vector<8x8xf32>
    %cst_57 = arith.constant dense<0xFF800000> : vector<8xf32>
    %144 = vector.multi_reduction <maximumf>, %143, %cst_57 [1] : vector<8x8xf32> to vector<8xf32>
    %145 = vector.shape_cast %144 : vector<8xf32> to vector<8x1xf32>
    %146 = vector.broadcast %145 : vector<8x1xf32> to vector<8x8xf32>
    %147 = arith.subf %143, %146 : vector<8x8xf32>
    %148 = math.exp %147 : vector<8x8xf32>
    %cst_58 = arith.constant dense<0.000000e+00> : vector<8xf32>
    %149 = vector.multi_reduction <add>, %148, %cst_58 [1] : vector<8x8xf32> to vector<8xf32>
    %150 = vector.shape_cast %149 : vector<8xf32> to vector<8x1xf32>
    %151 = tpu.reciprocal %150 {approx = true} : vector<8x1xf32> -> vector<8x1xf32>
    %152 = arith.mulf %150, %151 : vector<8x1xf32>
    %cst_59 = arith.constant 2.000000e+00 : f32
    %153 = vector.broadcast %cst_59 : f32 to vector<8x1xf32>
    %154 = arith.subf %153, %152 : vector<8x1xf32>
    %155 = arith.mulf %151, %154 : vector<8x1xf32>
    %156 = vector.broadcast %155 : vector<8x1xf32> to vector<8x8xf32>
    %157 = arith.mulf %148, %156 : vector<8x8xf32>
    %c0_60 = arith.constant 0 : index
    %c6 = arith.constant 6 : index
    %c0_61 = arith.constant 0 : index
    %c0_62 = arith.constant 0 : index
    %158 = vector.load %arg8[%c0_60, %c6, %c0_61, %c0_62] : memref<1x8x8x8xf32, #tpu.memory_space<vmem>>, vector<1x1x8x8xf32>
    %159 = vector.shape_cast %158 : vector<1x1x8x8xf32> to vector<8x8xf32>
    %160 = vector.shape_cast %157 : vector<8x8xf32> to vector<1x1x8x8xf32>
    tpu.vector_store %arg8[%c0_60, %c6, %c0_61, %c0_62], %160 {strides = array<i32>} : memref<1x8x8x8xf32, #tpu.memory_space<vmem>>, vector<1x1x8x8xf32>,
    %cst_63 = arith.constant dense<0.000000e+00> : vector<8x4xf32>
    %161 = tpu.matmul %157, %142, %cst_63 {dimension_numbers = #tpu.dot_dimension_numbers<[1], [0], [0], [1], [0, 0, 1, 1], [], []>} : vector<8x8xf32>, vector<8x4xf32>, vector<8x4xf32> -> vector<8x4xf32>
    %162 = vector.extract_strided_slice %6 {offsets = [0, 28], sizes = [8, 4], strides = [1, 1]} : vector<8x32xf32> to vector<8x4xf32>
    %163 = vector.extract_strided_slice %7 {offsets = [0, 28], sizes = [8, 4], strides = [1, 1]} : vector<8x64xf32> to vector<8x4xf32>
    %164 = vector.extract_strided_slice %7 {offsets = [0, 60], sizes = [8, 4], strides = [1, 1]} : vector<8x64xf32> to vector<8x4xf32>
    %cst_64 = arith.constant dense<0.000000e+00> : vector<8x8xf32>
    %165 = tpu.matmul %162, %163, %cst_64 {dimension_numbers = #tpu.dot_dimension_numbers<[1], [1], [0], [0], [0, 0, 1, 0], [], []>} : vector<8x4xf32>, vector<8x4xf32>, vector<8x8xf32> -> vector<8x8xf32>
    %cst_65 = arith.constant dense<0xFF800000> : vector<8xf32>
    %166 = vector.multi_reduction <maximumf>, %165, %cst_65 [1] : vector<8x8xf32> to vector<8xf32>
    %167 = vector.shape_cast %166 : vector<8xf32> to vector<8x1xf32>
    %168 = vector.broadcast %167 : vector<8x1xf32> to vector<8x8xf32>
    %169 = arith.subf %165, %168 : vector<8x8xf32>
    %170 = math.exp %169 : vector<8x8xf32>
    %cst_66 = arith.constant dense<0.000000e+00> : vector<8xf32>
    %171 = vector.multi_reduction <add>, %170, %cst_66 [1] : vector<8x8xf32> to vector<8xf32>
    %172 = vector.shape_cast %171 : vector<8xf32> to vector<8x1xf32>
    %173 = tpu.reciprocal %172 {approx = true} : vector<8x1xf32> -> vector<8x1xf32>
    %174 = arith.mulf %172, %173 : vector<8x1xf32>
    %cst_67 = arith.constant 2.000000e+00 : f32
    %175 = vector.broadcast %cst_67 : f32 to vector<8x1xf32>
    %176 = arith.subf %175, %174 : vector<8x1xf32>
    %177 = arith.mulf %173, %176 : vector<8x1xf32>
    %178 = vector.broadcast %177 : vector<8x1xf32> to vector<8x8xf32>
    %179 = arith.mulf %170, %178 : vector<8x8xf32>
    %c0_68 = arith.constant 0 : index
    %c7 = arith.constant 7 : index
    %c0_69 = arith.constant 0 : index
    %c0_70 = arith.constant 0 : index
    %180 = vector.load %arg8[%c0_68, %c7, %c0_69, %c0_70] : memref<1x8x8x8xf32, #tpu.memory_space<vmem>>, vector<1x1x8x8xf32>
    %181 = vector.shape_cast %180 : vector<1x1x8x8xf32> to vector<8x8xf32>
    %182 = vector.shape_cast %179 : vector<8x8xf32> to vector<1x1x8x8xf32>
    tpu.vector_store %arg8[%c0_68, %c7, %c0_69, %c0_70], %182 {strides = array<i32>} : memref<1x8x8x8xf32, #tpu.memory_space<vmem>>, vector<1x1x8x8xf32>,
    %cst_71 = arith.constant dense<0.000000e+00> : vector<8x4xf32>
    %183 = tpu.matmul %179, %164, %cst_71 {dimension_numbers = #tpu.dot_dimension_numbers<[1], [0], [0], [1], [0, 0, 1, 1], [], []>} : vector<8x8xf32>, vector<8x4xf32>, vector<8x4xf32> -> vector<8x4xf32>
    %184 = tpu.concatenate %29, %51, %73, %95, %117, %139, %161, %183 in 1 : vector<8x4xf32>, vector<8x4xf32>, vector<8x4xf32>, vector<8x4xf32>, vector<8x4xf32>, vector<8x4xf32>, vector<8x4xf32>, vector<8x4xf32> -> vector<8x32xf32>
    %c0_72 = arith.constant 0 : index
    %c0_73 = arith.constant 0 : index
    %185 = vector.load %arg6[%c0_72, %c0_73] : memref<32x32xf32, #tpu.memory_space<vmem>>, vector<32x32xf32>
    %cst_74 = arith.constant dense<0.000000e+00> : vector<8x32xf32>
    %186 = tpu.matmul %184, %185, %cst_74 {dimension_numbers = #tpu.dot_dimension_numbers<[1], [0], [0], [1], [0, 0, 1, 1], [], []>} : vector<8x32xf32>, vector<32x32xf32>, vector<8x32xf32> -> vector<8x32xf32>
    %c0_75 = arith.constant 0 : index
    %c0_76 = arith.constant 0 : index
    %c0_77 = arith.constant 0 : index
    %187 = vector.load %arg7[%c0_75, %c0_76, %c0_77] : memref<1x8x32xf32, #tpu.memory_space<vmem>>, vector<1x8x32xf32>
    %188 = vector.shape_cast %187 : vector<1x8x32xf32> to vector<8x32xf32>
    %189 = vector.shape_cast %186 : vector<8x32xf32> to vector<1x8x32xf32>
    tpu.vector_store %arg7[%c0_75, %c0_76, %c0_77], %189 {strides = array<i32>} : memref<1x8x32xf32, #tpu.memory_space<vmem>>, vector<1x8x32xf32>,
    return
  }
  func.func @transform_0(%arg0: i32, %arg1: i32) -> (i32, i32, i32) {
    %c0_i32 = arith.constant 0 : i32
    %c0_i32_0 = arith.constant 0 : i32
    return %arg0, %arg1, %c0_i32 : i32, i32, i32
  }
  func.func @transform_1(%arg0: i32, %arg1: i32) -> (i32, i32, i32) {
    %c0_i32 = arith.constant 0 : i32
    %c0_i32_0 = arith.constant 0 : i32
    %c0_i32_1 = arith.constant 0 : i32
    return %arg0, %c0_i32, %c0_i32_0 : i32, i32, i32
  }
  func.func @transform_2(%arg0: i32, %arg1: i32) -> (i32, i32) {
    %c0_i32 = arith.constant 0 : i32
    %c0_i32_0 = arith.constant 0 : i32
    %c0_i32_1 = arith.constant 0 : i32
    return %c0_i32, %c0_i32_0 : i32, i32
  }
  func.func @transform_3(%arg0: i32, %arg1: i32) -> (i32, i32) {
    %c0_i32 = arith.constant 0 : i32
    %c0_i32_0 = arith.constant 0 : i32
    %c0_i32_1 = arith.constant 0 : i32
    return %c0_i32, %c0_i32_0 : i32, i32
  }
  func.func @transform_4(%arg0: i32, %arg1: i32) -> (i32, i32) {
    %c0_i32 = arith.constant 0 : i32
    %c0_i32_0 = arith.constant 0 : i32
    %c0_i32_1 = arith.constant 0 : i32
    return %c0_i32, %c0_i32_0 : i32, i32
  }
  func.func @transform_5(%arg0: i32, %arg1: i32) -> (i32, i32, i32) {
    %c0_i32 = arith.constant 0 : i32
    %c0_i32_0 = arith.constant 0 : i32
    return %arg0, %arg1, %c0_i32 : i32, i32, i32
  }
  func.func @transform_6(%arg0: i32, %arg1: i32) -> (i32, i32, i32, i32) {
    %c0_i32 = arith.constant 0 : i32
    %c0_i32_0 = arith.constant 0 : i32
    %c0_i32_1 = arith.constant 0 : i32
    return %arg0, %c0_i32, %arg1, %c0_i32_0 : i32, i32, i32, i32
  }
}

</mosaic_0001>

<bundles_post_ra>
// kernel: tpu_custom_call.1
= control target key start
LH: loop header
LB: loop body
LE: loop exit
PB: predicated region body
PF: predicated region fallthrough
CT: control target
= control target key end

     0   :  { %s3468_s0 = inlined_call_operand.hbm [shape: f32[2,8,32], index: 0, kind: input, shape index: {}]   ;;  %s3469_s1 = inlined_call_operand.hbm [shape: f32[2,8,32], index: 1, kind: input, shape index: {}]   ;;  %s3470_s2 = inlined_call_operand.hbm [shape: f32[32,32], index: 2, kind: input, shape index: {}]   ;;  %s3471_s3 = inlined_call_operand.hbm [shape: f32[32,64], index: 3, kind: input, shape index: {}]   ;;  %s3472_s4 = inlined_call_operand.hbm [shape: f32[32,32], index: 4, kind: input, shape index: {}]   ;;  %s3473_s5 = inlined_call_operand.hbm [shape: f32[2,8,32], index: 5, kind: output, shape index: {0}]   ;;  %s3474_s6 = inlined_call_operand.hbm [shape: f32[2,8,8,8], index: 6, kind: output, shape index: {1}]  }
   0x1   :  { %3483 = sst [smem:[#allocation22_spill]] %s3469_s1 }
   0x2   :  { %3484 = sst [smem:[#allocation23_spill]] %s3471_s3 }
   0x3   :  { %12 = vsyncpa [#allocation4], 0 }
   0x4   :  { %14 = vsyncpa [#allocation4 + $0x1], 0 }
   0x5   :  { %15 = vsyncpa [#allocation7], 0 }
   0x6   :  { %16 = vsyncpa [#allocation10], 0 }
   0x7   :  { %17 = vsyncpa [#allocation5], 0 }
   0x8   :  { %19 = vsyncpa [#allocation5 + $0x1], 0 }
   0x9   :  { %20 = vsyncpa [#allocation14], 0 }
   0xa   :  { %22 = vsyncpa [#allocation14 + $0x1], 0  ;;  %s2936_s21 = smov 0   ;;  %s2938_s22 = smov 0  }
   0xb   :  { %s2940_s23 = smov 0   ;;  %s2942_s24 = smov 0  }
   0xc   :  { %s2944_s25 = smov 0   ;;  %s2946_s26 = smov 0  }
   0xd LB: > { %s2193_s27 = sadd.s32 4294967295, %s2864_s26   ;;  %s2194_s28 = sadd.s32 4294967294, %s2864_s26   ;;  %s2864_s26 = sphi %s2946_s26, %s28_s26   ;;  %s2860_s25 = sphi %s2944_s25, %s3511_s25   ;;  %s2856_s24 = sphi %s2942_s24, %s3510_s24   ;;  %s2852_s23 = sphi %s2940_s23, %s3509_s23   ;;  %s2848_s22 = sphi %s2938_s22, %s3508_s22   ;;  %s2844_s21 = sphi %s2936_s21, %s3507_s21  }
   0xe   : > { %p62_p0 = scmp.ne.s32.totalorder %s2848_s22, %s2844_s21  ;;  %p2970_p1 = scmp.eq.s32.totalorder %s2193_s27, 0 }
   0xf   : > { %p2974_p2 = scmp.eq.s32.totalorder %s2193_s27, 1  ;;  %p183_p3 = scmp.eq.s32.totalorder %s2194_s28, 1 }
  0x10   : > { %s3485_s29 = scalar_select %p2970_p1, 1, 0 }
  0x11   : > { %s3486_s30 = scalar_select %p2974_p2, 1, 0 }
  0x12   : > { %p2980_p4 = por %p2970_p1, %p62_p0  ;;  %p2195_p5 = scmp.ge.s32.totalorder %s2864_s26, 1 }
  0x13   : > { %p2985_p6 = por %p183_p3, %p62_p0  ;;  %p218_p7 = scmp.lt.s32.totalorder %s2864_s26, 3 }
  0x14   : > { %s3487_s7 = scalar_select %p2980_p4, 1, 0 }
  0x15   : > { %s3488_s8 = scalar_select %p2985_p6, 1, 0 }
  0x16   : > { %s3481_s9 = sshll.u32 %s2856_s24, 7  ;;  %p2991_p8 = pnand %p2195_p5, %p218_p7 }
  0x17   : > { %3489 = sst [smem:[#allocation21_spill]] %s3488_s8  ;;  %s3491_s1 = sld [smem:[#allocation22_spill]] }
  0x18   : > { %s3490_s10 = scalar_select %p2991_p8, 1, 0 }
  0x19   : > { %s2866_s14 = smov [#allocation6]   ;;  %p2450_p9 = pneg %p2991_p8 }
  0x1a   : > { %s233_s15 = sshll.u32 %s2866_s14, 4  ;;  %s234_s15 = int_to_ptr.vmem [resolvable:$true] %s233_s15 }
  0x1b   : > { %p3007_p11 = pnand %p2450_p9, %p2980_p4  ;;  %p3013_p12 = pnand %p2450_p9, %p2970_p1 }
  0x1d   : > { %s3000_s13 = scalar_lea.hbm %s3491_s1, %s3481_s9  ;;  %p2596_p0 = pneg %p3007_p11 }
  0x1e   : > { %s3493_s17 = scalar_select %p3013_p12, 1, 0 }
  0x1f   : > { %s2594_s18 = scalar_lea.hbm %s3000_s13, 128  ;;  %s2599_s27 = scalar_lea.hbm %s3491_s1, 256 }
  0x20   : > { %p2595_p13 = scmp.ne.s32.totalorder %s3000_s13, %s2594_s18  ;;  %p2600_p7 = scmp.lt.u32.totalorder %s3000_s13, %s3491_s1 }
  0x21   : > { %p2601_p9 = scmp.lt.u32.totalorder %s2599_s27, %s2594_s18  ;;  %p2603_p6 = scmp.lt.u32.totalorder %s2594_s18, %s3000_s13 }
  0x22   : > { %p2597_p3 = pnand %p2596_p0, %p2595_p13 }
  0x23   : > { %p2602_p10 = por %p2601_p9, %p2600_p7 }
  0x24   : > { %p2598_p5 = pneg %p2597_p3 }
  0x25   : > { %p2604_p1 = por %p2603_p6, %p2602_p10 }
  0x27   : > { %p2605_p4 = pnand %p2604_p1, %p2598_p5 }
  0x29   : > { %2608 = shalt.err (!%p2605_p4)
}
  0x2a   : > { %s2609_s12 = scalar_lea.vmem %s234_s15, 128  ;;  %p2617_p2 = scmp.lt.s32.totalorder %s234_s15, %s234_s15 }
  0x2b   : > { %p2610_p8 = scmp.ne.s32.totalorder %s234_s15, %s2609_s12  ;;  %p2618_p12 = scmp.lt.s32.totalorder %s2609_s12, %s2609_s12 }
  0x2d   : > { %p2612_p13 = pnand %p2610_p8, %p2596_p0  ;;  %p2619_p7 = por %p2618_p12, %p2617_p2 }
  0x2f   : > { %p2613_p3 = pneg %p2612_p13 }
  0x31   : > { %p2620_p9 = pnand %p2619_p7, %p2613_p3 }
  0x33   : > { %2623 = shalt.err (!%p2620_p9)
}
  0x34   : > { %2453 = dma.hbm_to_vmem [thread:$0]  (!%p3007_p11), %s3000_s13, 128, %s234_s15, [#allocation7]  }
  0x35   : > { %s2867_s14 = smov [#allocation9]   ;;  %s2868_s19 = smov [#allocation8]  }
  0x36   : > { %s256_s18 = sshll.u32 %s2867_s14, 4  ;;  %s243_s20 = sshll.u32 %s2868_s19, 4  ;;  %s257_s18 = int_to_ptr.vmem [resolvable:$true] %s256_s18  ;;  %s244_s20 = int_to_ptr.vmem [resolvable:$true] %s243_s20 }
  0x37   : > { %s3494_s3 = sld [smem:[#allocation23_spill]]  ;;  %p3495_p2 = scmp.ne.s32.totalorder %s3493_s17, 0 }
  0x39   : > { %p3046_p4 = pneg %p3495_p2 }
  0x3d   : > { %s2624_s11 = scalar_lea.hbm %s3494_s3, 512 }
  0x3e   : > { %p2625_p1 = scmp.ne.s32.totalorder %s3494_s3, %s2624_s11  ;;  %p2631_p10 = scmp.lt.u32.totalorder %s2624_s11, %s3494_s3 }
  0x40   : > { %p2627_p6 = pnand %p3046_p4, %p2625_p1 }
  0x42   : > { %p2628_p8 = pneg %p2627_p6 }
  0x44   : > { %p2633_p11 = pnand %p2631_p10, %p2628_p8 }
  0x46   : > { %2636 = shalt.err (!%p2633_p11)
}
  0x47   : > { %s2637_s16 = scalar_lea.vmem %s257_s18, 512  ;;  %p2645_p13 = scmp.lt.s32.totalorder %s257_s18, %s257_s18 }
  0x48   : > { %p2638_p12 = scmp.ne.s32.totalorder %s257_s18, %s2637_s16  ;;  %p2646_p3 = scmp.lt.s32.totalorder %s2637_s16, %s2637_s16 }
  0x4a   : > { %p2640_p0 = pnand %p2638_p12, %p3046_p4  ;;  %p2647_p7 = por %p2646_p3, %p2645_p13 }
  0x4c   : > { %p2641_p5 = pneg %p2640_p0 }
  0x4e   : > { %p2648_p9 = pnand %p2647_p7, %p2641_p5 }
  0x50   : > { %2651 = shalt.err (!%p2648_p9)
}
  0x51   : > { %s2869_s1 = smov 128   ;;  %s2870_s9 = smov 8  }
  0x52   : > { %2459 = dma.hbm_to_vmem [thread:$0]  (!%p3495_p2), %s3494_s3, 512, %s257_s18, [#allocation10], %s2869_s1, %s2869_s1, %s2870_s9  }
  0x53   : > { %s2652_s11 = scalar_lea.hbm %s3470_s2, 512 }
  0x54   : > { %p2653_p1 = scmp.ne.s32.totalorder %s3470_s2, %s2652_s11  ;;  %p2659_p10 = scmp.lt.u32.totalorder %s2652_s11, %s3470_s2 }
  0x56   : > { %p2655_p6 = pnand %p2653_p1, %p3046_p4 }
  0x58   : > { %p2656_p8 = pneg %p2655_p6 }
  0x5a   : > { %p2661_p11 = pnand %p2659_p10, %p2656_p8 }
  0x5c   : > { %2664 = shalt.err (!%p2661_p11)
}
  0x5d   : > { %s2665_s14 = scalar_lea.vmem %s244_s20, 512  ;;  %p2673_p13 = scmp.lt.s32.totalorder %s244_s20, %s244_s20 }
  0x5e   : > { %p2666_p12 = scmp.ne.s32.totalorder %s244_s20, %s2665_s14  ;;  %p2674_p3 = scmp.lt.s32.totalorder %s2665_s14, %s2665_s14 }
  0x60   : > { %p2668_p0 = pnand %p2666_p12, %p3046_p4  ;;  %p2675_p7 = por %p2674_p3, %p2673_p13 }
  0x62   : > { %p2669_p5 = pneg %p2668_p0 }
  0x64   : > { %p2676_p9 = pnand %p2675_p7, %p2669_p5 }
  0x66   : > { %2679 = shalt.err (!%p2676_p9)
}
  0x67   : > { %2456 = dma.hbm_to_vmem [thread:$0]  (!%p3495_p2), %s3470_s2, 512, %s244_s20, [#allocation7], %s2869_s1, %s2869_s1, %s2870_s9  }
  0x68   : > { %s2871_s19 = smov [#allocation11]   ;;  %s2680_s13 = scalar_lea.hbm %s3472_s4, 512 }
  0x69   : > { %s269_s27 = sshll.u32 %s2871_s19, 4  ;;  %p2681_p1 = scmp.ne.s32.totalorder %s3472_s4, %s2680_s13  ;;  %s270_s27 = int_to_ptr.vmem [resolvable:$true] %s269_s27 }
  0x6a   : > { %p2687_p10 = scmp.lt.u32.totalorder %s2680_s13, %s3472_s4 }
  0x6b   : > { %p2683_p6 = pnand %p2681_p1, %p3046_p4 }
  0x6d   : > { %p2684_p8 = pneg %p2683_p6 }
  0x6f   : > { %p2689_p11 = pnand %p2687_p10, %p2684_p8 }
  0x71   : > { %2692 = shalt.err (!%p2689_p11)
}
  0x72   : > { %s2693_s20 = scalar_lea.vmem %s270_s27, 512  ;;  %p2701_p13 = scmp.lt.s32.totalorder %s270_s27, %s270_s27 }
  0x73   : > { %p2694_p12 = scmp.ne.s32.totalorder %s270_s27, %s2693_s20  ;;  %p2702_p3 = scmp.lt.s32.totalorder %s2693_s20, %s2693_s20 }
  0x75   : > { %p2696_p0 = pnand %p2694_p12, %p3046_p4  ;;  %p2703_p7 = por %p2702_p3, %p2701_p13 }
  0x77   : > { %p2697_p5 = pneg %p2696_p0 }
  0x79   : > { %p2704_p9 = pnand %p2703_p7, %p2697_p5 }
  0x7b   : > { %2707 = shalt.err (!%p2704_p9)
}
  0x7c   : > { %2462 = dma.hbm_to_vmem [thread:$0]  (!%p3495_p2), %s3472_s4, 512, %s270_s27, [#allocation10], %s2869_s1, %s2869_s1, %s2870_s9  }
  0x7d   : > { %s40_s12 = sadd.s32 1, %s2860_s25  ;;  %s49_s17 = sadd.s32 1, %s2852_s23 }
  0x7e   : > { %p42_p4 = scmp.ge.s32.totalorder %s40_s12, 2  ;;  %p56_p1 = scmp.ne.s32.totalorder %s2852_s23, %s2848_s22 }
  0x7f   : > { %p57_p6 = scmp.eq.s32.totalorder %s2864_s26, 0  ;;  %p2477_p8 = scmp.lt.s32.totalorder %s2864_s26, 2 }
  0x80   : > { %s3513_s12 = smov (%p42_p4, %s40_s12), 0  ;;  %p3497_p11 = scmp.ne.s32.totalorder %s3486_s30, 0 }
  0x81   : > { %p58_p10 = por %p57_p6, %p56_p1  ;;  %s44_s19 = ssub.s32 %s2860_s25, %s3513_s12 }
  0x82   : > { %p3117_p12 = por %p3497_p11, %p56_p1  ;;  %s283_s28 = sand.u32 1, %s2852_s23  }
  0x83   : > { %p47_p0 = scmp.eq.s32.totalorder %s44_s19, 0  ;;  %s2201_s1 = sshll.u32 %s283_s28, 3 }
  0x84   : > { %s2202_s9 = sshll.u32 %s2860_s25, 7  ;;  %s287_s30 = scalar_lea.vmem [#allocation3], %s2201_s1 }
  0x85   : > { %s3126_s27 = scalar_select %p47_p0, %s2852_s23, %s49_s17  }
  0x86   : > { %s3131_s15 = scalar_lea.hbm %s3468_s0, %s2202_s9  ;;  %s295_s16 = sshll.u32 %s287_s30, 4  ;;  %s3139_s16 = int_to_ptr.vmem [resolvable:$true] %s295_s16 }
  0x87   : > { %p3135_p2 = pnand %p2477_p8, %p58_p10  ;;  %s284_s20 = scalar_lea.sflag [#allocation4], %s283_s28 }
  0x88   : > { %s2708_s3 = scalar_lea.hbm %s3131_s15, 128  ;;  %s2713_s19 = scalar_lea.hbm %s3468_s0, 256 }
  0x89   : > { %p2709_p5 = scmp.ne.s32.totalorder %s3131_s15, %s2708_s3  ;;  %p2710_p13 = pneg %p3135_p2 }
  0x8a   : > { %p2714_p9 = scmp.lt.u32.totalorder %s3131_s15, %s3468_s0  ;;  %p2715_p4 = scmp.lt.u32.totalorder %s2713_s19, %s2708_s3 }
  0x8b   : > { %p2711_p3 = pnand %p2710_p13, %p2709_p5  ;;  %p2717_p6 = scmp.lt.u32.totalorder %s2708_s3, %s3131_s15 }
  0x8c   : > { %p2716_p1 = por %p2715_p4, %p2714_p9 }
  0x8d   : > { %p2712_p7 = pneg %p2711_p3 }
  0x8e   : > { %p2718_p8 = por %p2717_p6, %p2716_p1 }
  0x90   : > { %p2719_p10 = pnand %p2718_p8, %p2712_p7 }
  0x92   : > { %2722 = shalt.err (!%p2719_p10)
}
  0x93   : > { %s2723_s28 = scalar_lea.vmem %s3139_s16, 128  ;;  %s2872_s11 = smov [#allocation3]  }
  0x94   : > { %p2724_p11 = scmp.ne.s32.totalorder %s3139_s16, %s2723_s28  ;;  %s2728_s13 = sshll.u32 %s2872_s11, 4  ;;  %s2729_s13 = int_to_ptr.vmem [resolvable:$false] %s2728_s13 }
  0x95   : > { %s2730_s30 = scalar_lea.vmem %s2729_s13, 256  ;;  %p2731_p3 = scmp.lt.s32.totalorder %s3139_s16, %s2729_s13 }
  0x96   : > { %p2726_p0 = pnand %p2724_p11, %p2710_p13  ;;  %p2732_p9 = scmp.lt.s32.totalorder %s2730_s30, %s2723_s28 }
  0x98   : > { %p2727_p5 = pneg %p2726_p0  ;;  %p2733_p4 = por %p2732_p9, %p2731_p3 }
  0x9a   : > { %p2734_p1 = pnand %p2733_p4, %p2727_p5 }
  0x9c   : > { %2737 = shalt.err (!%p2734_p1)
}
  0x9d   : > { %2466 = dma.hbm_to_vmem [thread:$0]  (!%p3135_p2), %s3131_s15, 128, %s3139_s16, %s284_s20  }
  0x9e   : > { %p3500_p7 = scmp.ne.s32.totalorder %s3490_s10, 0 }
  0x9f   : > { %s3169_s3 = sand.u32 (!%p3500_p7), 1, %s2848_s22   ;;  %p3501_p13 = scmp.ne.s32.totalorder (!%p3500_p7), %s3487_s7, 0 }
  0xa0   : > { %304 = sbr.rel (%p3500_p7) target bundleno = 1681 (0x691), region = 40  ;;  %s2204_s8 = sshll.u32 (!%p3500_p7), %s3169_s3, 3 }
  0xa1   : > { %s307_s17 = scalar_lea.sflag (!%p3500_p7), [#allocation4], %s3169_s3  ;;  %s3175_s19 = scalar_lea.vmem (!%p3500_p7), [#allocation3], %s2204_s8 }
  0xa7   : > { %2819 = dma.done.wait (%p3501_p13), %s307_s17, 128  }
  0xa8   : > { %2821 = vsyncadd (%p3501_p13), %s307_s17, 4294967168 }
  0xa9   : > { %2823 = dma.done.wait (%p3501_p13), [#allocation7], 128  }
  0xaa   : > { %2825 = vsyncadd (%p3501_p13), [#allocation7], 4294967168  ;;  %p3502_p2 = scmp.ne.s32.totalorder %s3485_s29, 0 }
  0xac   : > { %2827 = dma.done.wait (%p3502_p2), [#allocation7], 512  }
  0xad   : > { %2829 = vsyncadd (%p3502_p2), [#allocation7], 4294966784 }
  0xae   : > { %2831 = dma.done.wait (%p3502_p2), [#allocation10], 1024  }
  0xaf   : > { %2833 = vsyncadd (%p3502_p2), [#allocation10], 4294966272  ;;  %v2873_v0 = vmov 0.0|0.0   ;;  %vm2874_vm0 = vmmov 0   ;;  %v2875_v1 = vmov 0.0   ;;  %v365_v2 = vld [vmem:[#allocation9] sm:$0xff] }
  0xb0   : > { %2412 = vmatprep.subr.bf16.mxu0 %v2873_v0  ;;  %2307 = vmatprep.mubr.msk.f32.mxu0 %vm2874_vm0, %v2875_v1  ;;  %v366_v3 = vld [vmem:[#allocation9 + $0x8] sm:$0xff]  ;;  %v367_v4 = vld [vmem:[#allocation9 + $0x10] sm:$0xff]  ;;  %v368_v6 = vld [vmem:[#allocation9 + $0x18] sm:$0xff]  ;;  %vm369_vm1 = vcmask 261120   ;;  %vm443_vm2 = vcmask 523264   ;;  %vm525_vm3 = vcmask 31744  }
  0xb1   : > { %2418 = vmatprep.subr.bf16.mxu1 %v2873_v0  ;;  %2318 = vmatprep.mubr.msk.f32.mxu1 %vm2874_vm0, %v2875_v1  ;;  %v2413_v5 = vpack.c.bf16 %v366_v3, %v365_v2  ;;  %v446_v7 = vld [vmem:[#allocation8] sm:$0xff]  ;;  %v447_v8 = vld [vmem:[#allocation8 + $0x8] sm:$0xff]  ;;  %v448_v9 = vld [vmem:[#allocation8 + $0x10] sm:$0xff]  ;;  %v2416_v11 = vpack.c.bf16 %v368_v6, %v367_v4  ;;  %s2876_s29 = smov 120   ;;  %s2877_s7 = smov 124   ;;  %vm602_vm4 = vcmask 64512  }
  0xb2   : > { %v449_v10 = vld [vmem:[#allocation8 + $0x18] sm:$0xff]  ;;  %v2419_v12 = vpack.c.bf16 %v447_v8, %v446_v7  ;;  %v445_v15 = vld [vmem:[%s3175_s19] sm:$0xff]  ;;  %s2878_s10 = smov 116   ;;  %s2879_s15 = smov 112   ;;  %vm1914_vm5 = vcmask 97280   ;;  %vm1916_vm6 = vcmask 130048  }
  0xb3   : > { %2414 = vmatpush3.bf16.msra.mxu0 %v2413_v5  ;;  %v2422_v13 = vpack.c.bf16 %v449_v10, %v448_v9  ;;  %v364_v14 = vld [vmem:[#allocation6] sm:$0xff]  ;;  %s2880_s16 = smov 108   ;;  %s2881_s14 = smov 104   ;;  %vm1918_vm7 = vcmask 162816   ;;  %vm1920_vm8 = vcmask 195584   ;;  %vm1922_vm9 = vcmask 228352  }
  0xb4   : > { %2415 = vmatprep.subr.bf16.mxu0 %v2873_v0  ;;  %2420 = vmatpush3.bf16.msra.mxu1 %v2419_v12  ;;  %s2882_s20 = smov 100   ;;  %s2883_s1 = smov 96  }
  0xb5   : > { %2421 = vmatprep.subr.bf16.mxu1 %v2873_v0  ;;  %s2884_s9 = smov 88   ;;  %s2885_s28 = smov 84  }
  0xb6   : > { %s2886_s11 = smov 92   ;;  %s2887_s13 = smov 76  }
  0xb7   : > { %2417 = vmatpush3.bf16.msra.mxu0 %v2416_v11  ;;  %s2888_s30 = smov 80   ;;  %s2209_s17 = sshll.u32 %s3169_s3, 6 }
  0xb8   : > { %2331 = vmatprep.subr.mxu0 %v2875_v1  ;;  %2423 = vmatpush3.bf16.msra.mxu1 %v2422_v13  ;;  %s3317_s19 = scalar_lea.vmem [#allocation13], %s2209_s17 }
  0xb9   : > { %2321 = vmatprep.subr.mxu1 %v2875_v1  ;;  %s2036_s17 = sshll.u32 %s3317_s19, 4  ;;  %s3384_s17 = int_to_ptr.vmem [resolvable:$true] %s2036_s17 }
  0xba   : > { %2308 = vmatmul.mubr.msk.f32.vlgmr.msra.gmra.mrb[0].mxu0 %vm369_vm1, %v364_v14 }
  0xbb   : > { %2333 = vmatprep.mubr.msk.f32.mxu0 %vm2874_vm0, %v2875_v1  ;;  %2319 = vmatmul.mubr.msk.f32.vlgmr.msra.gmra.mrb[0].mxu1 %vm369_vm1, %v445_v15 }
  0xbc   : > { %2323 = vmatprep.mubr.msk.f32.mxu1 %vm2874_vm0, %v2875_v1 }
 0x18d   : > { %v439_v16 = vpop.f32.mrb[0].mxu0 }
 0x18e   : > { %444 = vst.msk [vmem:[#allocation2] sm:$0xff] %vm443_vm2, %v439_v16  ;;  %v2309_v17 = vpop.f32.mrb[1].mxu0  ;;  %v520_v18 = vpop.f32.mrb[0].mxu1 }
 0x18f   : > { %v2320_v19 = vpop.f32.mrb[1].mxu1 }
 0x195   : > { %v3210_v20 = vld [vmem:[#allocation2] sm:$0xff] }
 0x196   : > { %866 = vrot.lane.b32.xlu1 %v3210_v20, %s2876_s29  ;;  %696 = vrot.lane.b32.xlu0 %v3210_v20, %s2877_s7 }
 0x197   : > { %2322 = vmatpush3.xpose.msk.msra.mxu1 %vm525_vm3, %v3210_v20 }
 0x198   : > { %2326 = vmatprep.subr.mxu1 %v2875_v1 }
 0x19a   : > { %2324 = vmatmul.mubr.msk.f32.vlgmr.msra.gmra.mrb[2].mxu1 %vm525_vm3, %v520_v18  ;;  %864 = vrot.lane.b32.xlu1 %v520_v18, %s2876_s29  ;;  %s2889_s29 = smov 68  }
 0x19b   : > { %694 = vrot.lane.b32.xlu0 %v520_v18, %s2877_s7  ;;  %2328 = vmatprep.mubr.msk.f32.mxu1 %vm2874_vm0, %v2875_v1  ;;  %s2890_s7 = smov 72  }
 0x19e   : > { %1034 = vrot.lane.b32.xlu1 %v520_v18, %s2878_s10 }
 0x19f   : > { %1036 = vrot.lane.b32.xlu0 %v3210_v20, %s2878_s10  ;;  %s2891_s10 = smov 4  }
 0x1a2   : > { %1204 = vrot.lane.b32.xlu1 %v520_v18, %s2879_s15 }
 0x1a3   : > { %1206 = vrot.lane.b32.xlu0 %v3210_v20, %s2879_s15  ;;  %s2892_s15 = smov 8  }
 0x1a6   : > { %1374 = vrot.lane.b32.xlu1 %v520_v18, %s2880_s16 }
 0x1a7   : > { %1376 = vrot.lane.b32.xlu0 %v3210_v20, %s2880_s16  ;;  %s2893_s16 = smov 12  }
 0x1aa   : > { %1544 = vrot.lane.b32.xlu1 %v520_v18, %s2881_s14 }
 0x1ab   : > { %1546 = vrot.lane.b32.xlu0 %v3210_v20, %s2881_s14  ;;  %s2894_s14 = smov 16  }
 0x1ae   : > { %1714 = vrot.lane.b32.xlu1 %v520_v18, %s2882_s20 }
 0x1af   : > { %1716 = vrot.lane.b32.xlu0 %v3210_v20, %s2882_s20  ;;  %s2895_s20 = smov 20  }
 0x1b2   : > { %618 = vrot.lane.b32.xlu1 %v3210_v20, %s2883_s1  ;;  %s2896_s1 = smov 24  }
 0x208   : > { %v867_v21 = vpop.permute.xlu1 %866  ;;  %v697_v22 = vpop.permute.xlu0 %696 }
 0x209   : > { %2332 = vmatpush3.xpose.msk.msra.mxu0 %vm525_vm3, %v697_v22 }
 0x20a   : > { %2341 = vmatprep.subr.mxu0 %v2875_v1 }
 0x20c   : > { %v865_v23 = vpop.permute.xlu1 %864 }
 0x20d   : > { %v695_v24 = vpop.permute.xlu0 %694 }
 0x20e   : > { %2334 = vmatmul.mubr.msk.f32.vlgmr.msra.gmra.mrb[2].mxu0 %vm525_vm3, %v695_v24 }
 0x20f   : > { %2342 = vmatpush3.xpose.msk.msra.mxu0 %vm525_vm3, %v867_v21  ;;  %2343 = vmatprep.mubr.msk.f32.mxu0 %vm2874_vm0, %v2875_v1 }
 0x210   : > { %v1035_v25 = vpop.permute.xlu1 %1034  ;;  %2351 = vmatprep.subr.mxu0 %v2875_v1 }
 0x211   : > { %v1037_v26 = vpop.permute.xlu0 %1036 }
 0x212   : > { %2344 = vmatmul.mubr.msk.f32.vlgmr.msra.gmra.mrb[4].mxu0 %vm525_vm3, %v865_v23 }
 0x213   : > { %2352 = vmatpush3.xpose.msk.msra.mxu0 %vm525_vm3, %v1037_v26  ;;  %2353 = vmatprep.mubr.msk.f32.mxu0 %vm2874_vm0, %v2875_v1 }
 0x214   : > { %v1205_v27 = vpop.permute.xlu1 %1204  ;;  %2361 = vmatprep.subr.mxu0 %v2875_v1 }
 0x215   : > { %v1207_v28 = vpop.permute.xlu0 %1206 }
 0x216   : > { %2354 = vmatmul.mubr.msk.f32.vlgmr.msra.gmra.mrb[6].mxu0 %vm525_vm3, %v1035_v25 }
 0x217   : > { %2362 = vmatpush3.xpose.msk.msra.mxu0 %vm525_vm3, %v1207_v28  ;;  %2363 = vmatprep.mubr.msk.f32.mxu0 %vm2874_vm0, %v2875_v1 }
 0x218   : > { %v1375_v29 = vpop.permute.xlu1 %1374  ;;  %2371 = vmatprep.subr.mxu0 %v2875_v1 }
 0x219   : > { %v1377_v30 = vpop.permute.xlu0 %1376 }
 0x21a   : > { %2364 = vmatmul.mubr.msk.f32.vlgmr.msra.gmra.mrb[8].mxu0 %vm525_vm3, %v1205_v27 }
 0x21b   : > { %2372 = vmatpush3.xpose.msk.msra.mxu0 %vm525_vm3, %v1377_v30  ;;  %2373 = vmatprep.mubr.msk.f32.mxu0 %vm2874_vm0, %v2875_v1 }
 0x21c   : > { %v1545_v31 = vpop.permute.xlu1 %1544  ;;  %2381 = vmatprep.subr.mxu0 %v2875_v1 }
 0x21d   : > { %v1547_v32 = vpop.permute.xlu0 %1546 }
 0x21e   : > { %2374 = vmatmul.mubr.msk.f32.vlgmr.msra.gmra.mrb[10].mxu0 %vm525_vm3, %v1375_v29 }
 0x21f   : > { %2382 = vmatpush3.xpose.msk.msra.mxu0 %vm525_vm3, %v1547_v32  ;;  %2383 = vmatprep.mubr.msk.f32.mxu0 %vm2874_vm0, %v2875_v1 }
 0x220   : > { %v1715_v33 = vpop.permute.xlu1 %1714  ;;  %2391 = vmatprep.subr.mxu0 %v2875_v1 }
 0x221   : > { %v1717_v34 = vpop.permute.xlu0 %1716 }
 0x222   : > { %2384 = vmatmul.mubr.msk.f32.vlgmr.msra.gmra.mrb[12].mxu0 %vm525_vm3, %v1545_v31 }
 0x223   : > { %2392 = vmatpush3.xpose.msk.msra.mxu0 %vm525_vm3, %v1717_v34  ;;  %2393 = vmatprep.mubr.msk.f32.mxu0 %vm2874_vm0, %v2875_v1 }
 0x224   : > { %v619_v35 = vpop.permute.xlu1 %618  ;;  %2424 = vmatprep.subr.bf16.mxu0 %v2873_v0 }
 0x225   : > { %2327 = vmatpush3.msra.mxu1 %v619_v35 }
 0x226   : > { %2394 = vmatmul.mubr.msk.f32.vlgmr.msra.gmra.mrb[14].mxu0 %vm525_vm3, %v1715_v33  ;;  %2336 = vmatprep.subr.mxu1 %v2875_v1 }
 0x227   : > { %2409 = vmatprep.mubr.msk.f32.mxu0 %vm2874_vm0, %v2875_v1 }
 0x26d   : > { %v598_v36 = vpop.f32.mrb[2].mxu1 }
 0x26e   : > { %v2325_v37 = vpop.f32.mrb[3].mxu1  ;;  %v603_v38 = vsel %vm602_vm4, %v598_v36, -inf }
 0x26f   : > { %604 = vmax.xlane.f32.xlu0 %v603_v38 }
 0x2e1   : > { %v768_v39 = vpop.f32.mrb[2].mxu0 }
 0x2e2   : > { %v2335_v40 = vpop.f32.mrb[3].mxu0  ;;  %v772_v41 = vsel %vm602_vm4, %v768_v39, -inf }
 0x2e3   : > { %773 = vmax.xlane.f32.xlu1 %v772_v41 }
 0x2e5   : > { %v938_v42 = vpop.f32.mrb[4].mxu0 }
 0x2e6   : > { %v2345_v43 = vpop.f32.mrb[5].mxu0  ;;  %v942_v44 = vsel %vm602_vm4, %v938_v42, -inf }
 0x2e7   : > { %943 = vmax.xlane.f32.xlu0 %v942_v44 }
 0x2e9   : > { %v1108_v45 = vpop.f32.mrb[6].mxu0 }
 0x2ea   : > { %v2355_v46 = vpop.f32.mrb[7].mxu0  ;;  %v1112_v47 = vsel %vm602_vm4, %v1108_v45, -inf }
 0x2eb   : > { %1113 = vmax.xlane.f32.xlu0 %v1112_v47 }
 0x2ed   : > { %v1278_v48 = vpop.f32.mrb[8].mxu0 }
 0x2ee   : > { %v2365_v49 = vpop.f32.mrb[9].mxu0  ;;  %v1282_v50 = vsel %vm602_vm4, %v1278_v48, -inf }
 0x2ef   : > { %1283 = vmax.xlane.f32.xlu1 %v1282_v50 }
 0x2f1   : > { %v1448_v51 = vpop.f32.mrb[10].mxu0 }
 0x2f2   : > { %v2375_v52 = vpop.f32.mrb[11].mxu0  ;;  %v1452_v53 = vsel %vm602_vm4, %v1448_v51, -inf }
 0x2f3   : > { %1453 = vmax.xlane.f32.xlu0 %v1452_v53 }
 0x2f5   : > { %v3268_v54 = vpop.f32.mrb[12].mxu0 }
 0x2f6   : > { %v2385_v55 = vpop.f32.mrb[13].mxu0  ;;  %v1622_v56 = vsel %vm602_vm4, %v3268_v54, -inf }
 0x2f7   : > { %1623 = vmax.xlane.f32.xlu1 %v1622_v56 }
 0x2f9   : > { %v3272_v57 = vpop.f32.mrb[14].mxu0 }
 0x2fa   : > { %v2395_v58 = vpop.f32.mrb[15].mxu0  ;;  %v1792_v59 = vsel %vm602_vm4, %v3272_v57, -inf }
 0x2fb   : > { %1793 = vmax.xlane.f32.xlu0 %v1792_v59 }
 0x2fc   : > { %v605_v60 = vpop.xlane.xlu0 %604 }
 0x2fd   : > { %v606_v61 = vsub.f32 %v598_v36, %v605_v60 }
 0x2ff   : > { %v607_v62 = vmul.f32 1.442695, %v606_v61 }
 0x301   : > { %2562 = vpow2.f32 %v607_v62 }
 0x308   : > { %958 = vrot.lane.b32.xlu1 %v3210_v20, %s2884_s9  ;;  %s2897_s9 = smov 28  }
 0x30b   : > { %v3279_v63 = vpop.eup %2562 }
 0x30c   : > { %1128 = vrot.lane.b32.xlu1 %v3210_v20, %s2885_s28  ;;  %v609_v2 = vsel %vm602_vm4, %v3279_v63, 0.0  ;;  %s2251_s28 = sshll.u32 %s2856_s24, 10 }
 0x311   : > { %788 = vrot.lane.b32.xlu0 %v3210_v20, %s2886_s11 }
 0x330   : > { %610 = vadd.xlane.f32.xlu1 %v609_v2 }
 0x370   : > { %v774_v3 = vpop.xlane.xlu1 %773 }
 0x371   : > { %v775_v4 = vsub.f32 %v768_v39, %v774_v3 }
 0x373   : > { %v776_v5 = vmul.f32 1.442695, %v775_v4 }
 0x374   : > { %v944_v6 = vpop.xlane.xlu0 %943 }
 0x375   : > { %2564 = vpow2.f32 %v776_v5  ;;  %v945_v7 = vsub.f32 %v938_v42, %v944_v6 }
 0x377   : > { %v946_v8 = vmul.f32 1.442695, %v945_v7 }
 0x378   : > { %v1114_v9 = vpop.xlane.xlu0 %1113 }
 0x379   : > { %2566 = vpow2.f32 %v946_v8  ;;  %v1115_v10 = vsub.f32 %v1108_v45, %v1114_v9 }
 0x37b   : > { %v1116_v11 = vmul.f32 1.442695, %v1115_v10 }
 0x37c   : > { %v1284_v12 = vpop.xlane.xlu1 %1283 }
 0x37d   : > { %2568 = vpow2.f32 %v1116_v11  ;;  %v1285_v13 = vsub.f32 %v1278_v48, %v1284_v12 }
 0x37f   : > { %v3283_v14 = vpop.eup %2564  ;;  %v1286_v15 = vmul.f32 1.442695, %v1285_v13 }
 0x380   : > { %v1454_v16 = vpop.xlane.xlu0 %1453  ;;  %v778_v17 = vsel %vm602_vm4, %v3283_v14, 0.0 }
 0x381   : > { %2570 = vpow2.f32 %v1286_v15  ;;  %v1455_v18 = vsub.f32 %v1448_v51, %v1454_v16  ;;  %779 = vadd.xlane.f32.xlu0 %v778_v17 }
 0x383   : > { %v3287_v19 = vpop.eup %2566  ;;  %v1456_v21 = vmul.f32 1.442695, %v1455_v18 }
 0x384   : > { %v948_v22 = vsel %vm602_vm4, %v3287_v19, 0.0  ;;  %v1624_v29 = vpop.xlane.xlu1 %1623 }
 0x385   : > { %2572 = vpow2.f32 %v1456_v21  ;;  %949 = vadd.xlane.f32.xlu1 %v948_v22  ;;  %v1625_v30 = vsub.f32 %v3268_v54, %v1624_v29 }
 0x387   : > { %v3291_v23 = vpop.eup %2568  ;;  %v1626_v32 = vmul.f32 1.442695, %v1625_v30 }
 0x388   : > { %v1118_v24 = vsel %vm602_vm4, %v3291_v23, 0.0  ;;  %v1794_v31 = vpop.xlane.xlu0 %1793  ;;  %v959_v34 = vpop.permute.xlu1 %958 }
 0x389   : > { %1119 = vadd.xlane.f32.xlu0 %v1118_v24  ;;  %v1795_v33 = vsub.f32 %v3272_v57, %v1794_v31  ;;  %2574 = vpow2.f32 %v1626_v32 }
 0x38b   : > { %v3295_v25 = vpop.eup %2570  ;;  %v1796_v35 = vmul.f32 1.442695, %v1795_v33 }
 0x38c   : > { %v1288_v26 = vsel %vm602_vm4, %v3295_v25, 0.0  ;;  %v1129_v36 = vpop.permute.xlu1 %1128  ;;  %v789_v47 = vpop.permute.xlu0 %788 }
 0x38d   : > { %1289 = vadd.xlane.f32.xlu1 %v1288_v26  ;;  %2576 = vpow2.f32 %v1796_v35 }
 0x38f   : > { %v3299_v27 = vpop.eup %2572 }
 0x390   : > { %v1458_v28 = vsel %vm602_vm4, %v3299_v27, 0.0 }
 0x391   : > { %1459 = vadd.xlane.f32.xlu0 %v1458_v28 }
 0x393   : > { %v3307_v38 = vpop.eup %2574 }
 0x394   : > { %v1628_v39 = vsel %vm602_vm4, %v3307_v38, 0.0 }
 0x397   : > { %v3311_v40 = vpop.eup %2576 }
 0x398   : > { %v1798_v41 = vsel %vm602_vm4, %v3311_v40, 0.0 }
 0x39e   : > { %1468 = vrot.lane.b32.xlu1 %v3210_v20, %s2887_s13 }
 0x3a7   : > { %1298 = vrot.lane.b32.xlu0 %v3210_v20, %s2888_s30  ;;  %s3381_s30 = scalar_lea.hbm %s3474_s6, %s2251_s28 }
 0x3bd   : > { %v611_v37 = vpop.xlane.xlu1 %610 }
 0x3be   : > { %2578 = vrcp.f32 %v611_v37 }
 0x3c2   : > { %1629 = vadd.xlane.f32.xlu1 %v1628_v39 }
 0x3c6   : > { %1799 = vadd.xlane.f32.xlu0 %v1798_v41 }
 0x3c8   : > { %v2579_v42 = vpop.eup %2578 }
 0x3c9   : > { %v613_v43 = vmul.f32 %v2579_v42, %v611_v37  ;;  %v1924_v37 = vld [vmem:[#allocation11] sm:$0xff] }
 0x3cb   : > { %v614_v44 = vsub.f32 2.0, %v613_v43 }
 0x3cd   : > { %v615_v45 = vmul.f32 %v2579_v42, %v614_v44 }
 0x3cf   : > { %v616_v46 = vmul.f32 %v3279_v63, %v615_v45 }
 0x3d1   : > { %617 = vst.msk [vmem:[%s3317_s19] sm:$0xff] %vm602_vm4, %v616_v46  ;;  %2329 = vmatmul.mubr.msk.f32.vlgmr.msra.gmra.mrb[4].mxu1 %vm602_vm4, %v616_v46  ;;  %v1926_v46 = vld [vmem:[#allocation11 + $0x10] sm:$0xff] }
 0x3d2   : > { %2337 = vmatpush3.msra.mxu1 %v789_v47  ;;  %2338 = vmatprep.mubr.msk.f32.mxu1 %vm2874_vm0, %v2875_v1  ;;  %v1927_v47 = vld [vmem:[#allocation11 + $0x18] sm:$0xff] }
 0x3d3   : > { %1808 = vrot.lane.b32.xlu1 %v3210_v20, %s2889_s29  ;;  %2346 = vmatprep.subr.mxu1 %v2875_v1  ;;  %s2008_s29 = scalar_lea.sflag [#allocation14], %s3169_s3 }
 0x3dc   : > { %1638 = vrot.lane.b32.xlu0 %v3210_v20, %s2890_s7  ;;  %s2738_s7 = scalar_lea.vmem %s3384_s17, 1024 }
 0x3dd   : > { %p2739_p6 = scmp.ne.s32.totalorder %s3384_s17, %s2738_s7 }
 0x3df   : > { %p2740_p8 = pnand %p2739_p6, %p3117_p12 }
 0x3e1   : > { %p2741_p10 = pneg %p2740_p8 }
 0x40e   : > { %v780_v48 = vpop.xlane.xlu0 %779 }
 0x40f   : > { %2580 = vrcp.f32 %v780_v48 }
 0x412   : > { %v950_v49 = vpop.xlane.xlu1 %949 }
 0x413   : > { %2582 = vrcp.f32 %v950_v49 }
 0x416   : > { %v1120_v50 = vpop.xlane.xlu0 %1119 }
 0x417   : > { %2584 = vrcp.f32 %v1120_v50 }
 0x419   : > { %v2581_v51 = vpop.eup %2580 }
 0x41a   : > { %v782_v52 = vmul.f32 %v2581_v51, %v780_v48  ;;  %v1290_v53 = vpop.xlane.xlu1 %1289  ;;  %v2428_v48 = vpack.c.bf16 %v1927_v47, %v1926_v46 }
 0x41b   : > { %2586 = vrcp.f32 %v1290_v53 }
 0x41c   : > { %v783_v54 = vsub.f32 2.0, %v782_v52 }
 0x41d   : > { %v2583_v55 = vpop.eup %2582 }
 0x41e   : > { %v784_v56 = vmul.f32 %v2581_v51, %v783_v54  ;;  %v952_v57 = vmul.f32 %v2583_v55, %v950_v49  ;;  %v1460_v58 = vpop.xlane.xlu0 %1459 }
 0x41f   : > { %2588 = vrcp.f32 %v1460_v58 }
 0x420   : > { %v785_v20 = vmul.f32 %v3283_v14, %v784_v56  ;;  %v953_v59 = vsub.f32 2.0, %v952_v57  ;;  %v1469_v14 = vpop.permute.xlu1 %1468 }
 0x421   : > { %v2585_v60 = vpop.eup %2584 }
 0x422   : > { %2217 = vst.msk [vmem:[%s3317_s19 + $0x8] sm:$0xff] %vm602_vm4, %v785_v20  ;;  %v954_v61 = vmul.f32 %v2583_v55, %v953_v59  ;;  %v1122_v62 = vmul.f32 %v2585_v60, %v1120_v50  ;;  %2339 = vmatmul.mubr.msk.f32.vlgmr.msra.gmra.mrb[6].mxu1 %vm602_vm4, %v785_v20  ;;  %v1299_v11 = vpop.permute.xlu0 %1298 }
 0x423   : > { %2347 = vmatpush3.msra.mxu1 %v959_v34  ;;  %2348 = vmatprep.mubr.msk.f32.mxu1 %vm2874_vm0, %v2875_v1 }
 0x424   : > { %v955_v63 = vmul.f32 %v3287_v19, %v954_v61  ;;  %v1123_v2 = vsub.f32 2.0, %v1122_v62  ;;  %2356 = vmatprep.subr.mxu1 %v2875_v1 }
 0x425   : > { %v2587_v3 = vpop.eup %2586 }
 0x426   : > { %2221 = vst.msk [vmem:[%s3317_s19 + $0x10] sm:$0xff] %vm602_vm4, %v955_v63  ;;  %v1124_v4 = vmul.f32 %v2585_v60, %v1123_v2  ;;  %v1292_v5 = vmul.f32 %v2587_v3, %v1290_v53  ;;  %2349 = vmatmul.mubr.msk.f32.vlgmr.msra.gmra.mrb[8].mxu1 %vm602_vm4, %v955_v63 }
 0x427   : > { %2357 = vmatpush3.msra.mxu1 %v1129_v36  ;;  %2358 = vmatprep.mubr.msk.f32.mxu1 %vm2874_vm0, %v2875_v1 }
 0x428   : > { %v1125_v6 = vmul.f32 %v3291_v23, %v1124_v4  ;;  %v1293_v7 = vsub.f32 2.0, %v1292_v5  ;;  %2366 = vmatprep.subr.mxu1 %v2875_v1 }
 0x429   : > { %v2589_v8 = vpop.eup %2588 }
 0x42a   : > { %2225 = vst.msk [vmem:[%s3317_s19 + $0x18] sm:$0xff] %vm602_vm4, %v1125_v6  ;;  %v1294_v9 = vmul.f32 %v2587_v3, %v1293_v7  ;;  %v1462_v10 = vmul.f32 %v2589_v8, %v1460_v58  ;;  %2359 = vmatmul.mubr.msk.f32.vlgmr.msra.gmra.mrb[10].mxu1 %vm602_vm4, %v1125_v6 }
 0x42b   : > { %2367 = vmatpush3.msra.mxu1 %v1299_v11  ;;  %2368 = vmatprep.mubr.msk.f32.mxu1 %vm2874_vm0, %v2875_v1 }
 0x42c   : > { %v1295_v12 = vmul.f32 %v3295_v25, %v1294_v9  ;;  %v1463_v13 = vsub.f32 2.0, %v1462_v10  ;;  %2376 = vmatprep.subr.mxu1 %v2875_v1 }
 0x42e   : > { %2229 = vst.msk [vmem:[%s3317_s19 + $0x20] sm:$0xff] %vm602_vm4, %v1295_v12  ;;  %v1464_v15 = vmul.f32 %v2589_v8, %v1463_v13  ;;  %2369 = vmatmul.mubr.msk.f32.vlgmr.msra.gmra.mrb[12].mxu1 %vm602_vm4, %v1295_v12 }
 0x42f   : > { %2377 = vmatpush3.msra.mxu1 %v1469_v14  ;;  %2378 = vmatprep.mubr.msk.f32.mxu1 %vm2874_vm0, %v2875_v1 }
 0x430   : > { %v1465_v16 = vmul.f32 %v3299_v27, %v1464_v15  ;;  %2386 = vmatprep.subr.mxu1 %v2875_v1 }
 0x432   : > { %2233 = vst.msk [vmem:[%s3317_s19 + $0x28] sm:$0xff] %vm602_vm4, %v1465_v16  ;;  %2379 = vmatmul.mubr.msk.f32.vlgmr.msra.gmra.mrb[14].mxu1 %vm602_vm4, %v1465_v16 }
 0x433   : > { %2388 = vmatprep.mubr.msk.f32.mxu1 %vm2874_vm0, %v2875_v1 }
 0x44f   : > { %v1630_v17 = vpop.xlane.xlu1 %1629 }
 0x450   : > { %2590 = vrcp.f32 %v1630_v17 }
 0x453   : > { %v1800_v18 = vpop.xlane.xlu0 %1799  ;;  %v1809_v29 = vpop.permute.xlu1 %1808 }
 0x454   : > { %2592 = vrcp.f32 %v1800_v18 }
 0x457   : > { %v1639_v19 = vpop.permute.xlu0 %1638 }
 0x458   : > { %2387 = vmatpush3.msra.mxu1 %v1639_v19 }
 0x459   : > { %2396 = vmatprep.subr.mxu1 %v2875_v1 }
 0x45a   : > { %v2591_v21 = vpop.eup %2590 }
 0x45b   : > { %v1632_v22 = vmul.f32 %v2591_v21, %v1630_v17 }
 0x45d   : > { %v1633_v23 = vsub.f32 2.0, %v1632_v22 }
 0x45e   : > { %v2593_v24 = vpop.eup %2592 }
 0x45f   : > { %v1634_v25 = vmul.f32 %v2591_v21, %v1633_v23  ;;  %v1802_v26 = vmul.f32 %v2593_v24, %v1800_v18 }
 0x461   : > { %v1635_v27 = vmul.f32 %v3307_v38, %v1634_v25  ;;  %v1803_v28 = vsub.f32 2.0, %v1802_v26  ;;  %v1925_v38 = vld [vmem:[#allocation11 + $0x8] sm:$0xff] }
 0x463   : > { %2237 = vst.msk [vmem:[%s3317_s19 + $0x30] sm:$0xff] %vm602_vm4, %v1635_v27  ;;  %v1804_v30 = vmul.f32 %v2593_v24, %v1803_v28  ;;  %2389 = vmatmul.mubr.msk.f32.vlgmr.msra.gmra.mrb[16].mxu1 %vm602_vm4, %v1635_v27 }
 0x464   : > { %2397 = vmatpush3.msra.mxu1 %v1809_v29  ;;  %2398 = vmatprep.mubr.msk.f32.mxu1 %vm2874_vm0, %v2875_v1  ;;  %v2425_v1 = vpack.c.bf16 %v1925_v38, %v1924_v37 }
 0x465   : > { %v1805_v31 = vmul.f32 %v3311_v40, %v1804_v30 }
 0x466   : > { %2426 = vmatpush3.bf16.msra.mxu0 %v2425_v1 }
 0x467   : > { %2241 = vst.msk [vmem:[%s3317_s19 + $0x38] sm:$0xff] %vm602_vm4, %v1805_v31  ;;  %2399 = vmatmul.mubr.msk.f32.vlgmr.msra.gmra.mrb[18].mxu1 %vm602_vm4, %v1805_v31  ;;  %2427 = vmatprep.subr.bf16.mxu0 %v2873_v0 }
 0x46a   : > { %2429 = vmatpush3.bf16.msra.mxu0 %v2428_v48 }
 0x4a4   : > { %v690_v32 = vpop.f32.mrb[4].mxu1 }
 0x4a5   : > { %v2330_v33 = vpop.f32.mrb[5].mxu1 }
 0x4f5   : > { %v860_v34 = vpop.f32.mrb[6].mxu1 }
 0x4f6   : > { %1885 = vrot.lane.b32.xlu0 %v860_v34, %s2891_s10  ;;  %v2340_v35 = vpop.f32.mrb[7].mxu1  ;;  %s2898_s10 = smov [#allocation13]  }
 0x4f9   : > { %v1030_v36 = vpop.f32.mrb[8].mxu1 }
 0x4fa   : > { %1889 = vrot.lane.b32.xlu1 %v1030_v36, %s2892_s15  ;;  %v2350_v39 = vpop.f32.mrb[9].mxu1 }
 0x4fd   : > { %v1200_v40 = vpop.f32.mrb[10].mxu1 }
 0x4fe   : > { %1893 = vrot.lane.b32.xlu0 %v1200_v40, %s2893_s16  ;;  %v2360_v41 = vpop.f32.mrb[11].mxu1  ;;  %s2742_s16 = sshll.u32 %s2898_s10, 4  ;;  %s2743_s16 = int_to_ptr.vmem [resolvable:$false] %s2742_s16 }
 0x4ff   : > { %p2745_p11 = scmp.lt.s32.totalorder %s3384_s17, %s2743_s16 }
 0x501   : > { %v1370_v42 = vpop.f32.mrb[12].mxu1 }
 0x502   : > { %1897 = vrot.lane.b32.xlu1 %v1370_v42, %s2894_s14  ;;  %v2370_v43 = vpop.f32.mrb[13].mxu1  ;;  %s2744_s14 = scalar_lea.vmem %s2743_s16, 2048 }
 0x503   : > { %p2746_p0 = scmp.lt.s32.totalorder %s2744_s14, %s2738_s7 }
 0x505   : > { %v1540_v44 = vpop.f32.mrb[14].mxu1  ;;  %p2747_p5 = por %p2746_p0, %p2745_p11 }
 0x506   : > { %1901 = vrot.lane.b32.xlu0 %v1540_v44, %s2895_s20  ;;  %v2380_v45 = vpop.f32.mrb[15].mxu1 }
 0x507   : > { %p2748_p3 = pnand %p2747_p5, %p2741_p10 }
 0x536   : > { %v1710_v49 = vpop.f32.mrb[16].mxu1 }
 0x537   : > { %1905 = vrot.lane.b32.xlu1 %v1710_v49, %s2896_s1  ;;  %v2390_v50 = vpop.f32.mrb[17].mxu1 }
 0x53a   : > { %v1880_v0 = vpop.f32.mrb[18].mxu1 }
 0x53b   : > { %1909 = vrot.lane.b32.xlu0 %v1880_v0, %s2897_s9  ;;  %v2400_v51 = vpop.f32.mrb[19].mxu1 }
 0x568   : > { %v1886_v52 = vpop.permute.xlu0 %1885 }
 0x569   : > { %v1912_v56 = vsel %vm525_vm3, %v690_v32, %v1886_v52 }
 0x56c   : > { %v1890_v53 = vpop.permute.xlu1 %1889 }
 0x56d   : > { %v1913_v57 = vsel %vm602_vm4, %v1912_v56, %v1890_v53 }
 0x570   : > { %v1894_v54 = vpop.permute.xlu0 %1893 }
 0x571   : > { %v1915_v20 = vsel %vm1914_vm5, %v1913_v57, %v1894_v54 }
 0x574   : > { %v1898_v55 = vpop.permute.xlu1 %1897 }
 0x575   : > { %v1917_v60 = vsel %vm1916_vm6, %v1915_v20, %v1898_v55 }
 0x578   : > { %v1902_v58 = vpop.permute.xlu0 %1901 }
 0x579   : > { %v1919_v61 = vsel %vm1918_vm7, %v1917_v60, %v1902_v58 }
 0x5a9   : > { %v1906_v59 = vpop.permute.xlu1 %1905 }
 0x5aa   : > { %v1921_v62 = vsel %vm1920_vm8, %v1919_v61, %v1906_v59 }
 0x5ad   : > { %v1910_v63 = vpop.permute.xlu0 %1909 }
 0x5ae   : > { %v1923_v2 = vsel %vm1922_vm9, %v1921_v62, %v1910_v63 }
 0x5af   : > { %2410 = vmatmul.mubr.msk.f32.vlgmr.msra.gmra.mrb[16].mxu0 %vm369_vm1, %v1923_v2 }
 0x5b0   : > { %2751 = shalt.err (!%p2748_p3)
}
 0x5b1   : > { %s2752_s19 = scalar_lea.hbm %s3381_s30, 1024  ;;  %s2756_s9 = scalar_lea.hbm %s3474_s6, 2048 }
 0x5b2   : > { %p2753_p9 = scmp.ne.s32.totalorder %s3381_s30, %s2752_s19  ;;  %p2757_p7 = scmp.lt.u32.totalorder %s3381_s30, %s3474_s6 }
 0x5b3   : > { %p2758_p13 = scmp.lt.u32.totalorder %s2756_s9, %s2752_s19  ;;  %p2760_p6 = scmp.lt.u32.totalorder %s2752_s19, %s3381_s30 }
 0x5b4   : > { %p2754_p4 = pnand %p2753_p9, %p3117_p12 }
 0x5b5   : > { %p2759_p2 = por %p2758_p13, %p2757_p7 }
 0x5b6   : > { %p2755_p1 = pneg %p2754_p4 }
 0x5b7   : > { %p2761_p8 = por %p2760_p6, %p2759_p2 }
 0x5b9   : > { %p2762_p10 = pnand %p2761_p8, %p2755_p1 }
 0x5bb   : > { %2765 = shalt.err (!%p2762_p10)
}
 0x5bc   : > { %s2899_s13 = smov 128   ;;  %s352_s7 = scalar_lea.vmem [#allocation12], %s2204_s8 }
 0x5bd   : > { %2447 = dma.vmem_to_hbm [thread:$0]  (%p3117_p12), %s3384_s17, 1024, %s3381_s30, %s2008_s29, %s2899_s13, %s2899_s13, %s2892_s15  }
 0x5be   : > { %s2022_s10 = sshll.u32 %s352_s7, 4  ;;  %s3503_s16 = sshll.u32 %s2856_s24, 7  ;;  %s3420_s10 = int_to_ptr.vmem [resolvable:$true] %s2022_s10 }
 0x5bf   : > { %s3418_s20 = scalar_lea.hbm %s3473_s5, %s3503_s16  ;;  %s2003_s1 = scalar_lea.sflag [#allocation5], %s3169_s3 }
 0x5c0   : > { %s2766_s15 = scalar_lea.vmem %s3420_s10, 128  ;;  %s2900_s24 = smov [#allocation12]  }
 0x5c1   : > { %p2767_p11 = scmp.ne.s32.totalorder %s3420_s10, %s2766_s15  ;;  %s2770_s8 = sshll.u32 %s2900_s24, 4  ;;  %s2771_s8 = int_to_ptr.vmem [resolvable:$false] %s2770_s8 }
 0x5c2   : > { %s2772_s30 = scalar_lea.vmem %s2771_s8, 256  ;;  %p2773_p3 = scmp.lt.s32.totalorder %s3420_s10, %s2771_s8 }
 0x5c3   : > { %p2768_p0 = pnand %p2767_p11, %p3117_p12  ;;  %p2774_p9 = scmp.lt.s32.totalorder %s2772_s30, %s2766_s15 }
 0x5c5   : > { %p2769_p5 = pneg %p2768_p0  ;;  %p2775_p4 = por %p2774_p9, %p2773_p3 }
 0x5c7   : > { %p2776_p1 = pnand %p2775_p4, %p2769_p5 }
 0x682   : > { %v1997_v3 = vpop.f32.mrb[16].mxu0 }
 0x683   : > { %2001 = vst.msk [vmem:[%s352_s7] sm:$0xff] %vm369_vm1, %v1997_v3  ;;  %v2411_v4 = vpop.f32.mrb[17].mxu0 }
 0x684   : > { %2779 = shalt.err (!%p2776_p1)
}
 0x685   : > { %s2780_s3 = scalar_lea.hbm %s3418_s20, 128  ;;  %s2784_s9 = scalar_lea.hbm %s3473_s5, 256 }
 0x686   : > { %p2781_p7 = scmp.ne.s32.totalorder %s3418_s20, %s2780_s3  ;;  %p2785_p6 = scmp.lt.u32.totalorder %s3418_s20, %s3473_s5 }
 0x687   : > { %p2786_p8 = scmp.lt.u32.totalorder %s2784_s9, %s2780_s3  ;;  %p2788_p11 = scmp.lt.u32.totalorder %s2780_s3, %s3418_s20 }
 0x688   : > { %p2782_p13 = pnand %p2781_p7, %p3117_p12 }
 0x689   : > { %p2787_p10 = por %p2786_p8, %p2785_p6 }
 0x68a   : > { %p2783_p2 = pneg %p2782_p13 }
 0x68b   : > { %p2789_p0 = por %p2788_p11, %p2787_p10 }
 0x68d   : > { %p2790_p5 = pnand %p2789_p0, %p2783_p2 }
 0x68f   : > { %2793 = shalt.err (!%p2790_p5)
}
 0x690   : > { %2446 = dma.vmem_to_hbm [thread:$0]  (%p3117_p12), %s3420_s10, 128, %s3418_s20, %s2003_s1  }
 0x691 PF: > { %s3504_s13 = sld [smem:[#allocation21_spill]]  ;;  %s2051_s7 = sand.u32 1, %s2844_s21  }
 0x692   : > { %p3506_p9 = scmp.ge.s32.totalorder %s2864_s26, 2  ;;  %s2052_s16 = scalar_lea.sflag [#allocation5], %s2051_s7 }
 0x697   : > { %p3505_p3 = scmp.ne.s32.totalorder %s3504_s13, 0 }
 0x699   : > { %p2468_p4 = pnand %p3506_p9, %p3505_p3 }
 0x69b   : > { %2835 = dma.done.wait (!%p2468_p4), %s2052_s16, 128  }
 0x69c   : > { %2837 = vsyncadd (!%p2468_p4), %s2052_s16, 4294967168  ;;  %s2061_s14 = scalar_lea.sflag [#allocation14], %s2051_s7 }
 0x69d   : > { %2839 = dma.done.wait (!%p2468_p4), %s2061_s14, 1024  }
 0x69e   : > { %2841 = vsyncadd (!%p2468_p4), %s2061_s14, 4294966272  ;;  %s28_s26 = sadd.s32 1, %s2864_s26   ;;  %s3507_s21 = smov %s2848_s22 }
 0x69f   : > { %p25_p1 = scmp.ge.s32.totalorder %s28_s26, 4   ;;  %s3508_s22 = smov %s2852_s23 }
 0x6a0   : > { %s3509_s23 = smov %s3126_s27  ;;  %s3510_s24 = smov %s2860_s25 }
 0x6a1   : > { %s3511_s25 = smov %s3513_s12  ;;  %27 = sbr.rel (!%p25_p1) target bundleno = 13 (0xd), region = 130 }
 0x6a8   :  { %2066 = vsyncpa [#allocation4], 1 }
 0x6a9   :  { %2068 = vsyncpa [#allocation4 + $0x1], 1 }
 0x6aa   :  { %2069 = vsyncpa [#allocation7], 1 }
 0x6ab   :  { %2070 = vsyncpa [#allocation10], 1 }
 0x6ac   :  { %2071 = vsyncpa [#allocation5], 1 }
 0x6ad   :  { %2073 = vsyncpa [#allocation5 + $0x1], 1 }
 0x6ae   :  { %2074 = vsyncpa [#allocation14], 1 }
 0x6af   :  { %2076 = vsyncpa [#allocation14 + $0x1], 1 }

</bundles_post_ra>
